<compile_context>
chip_gen: v6e
topology: v6e:2x2x1
jax: 0.10.0
libtpu: 0.0.40
codegen_flags: <defaults>
</compile_context>

<pallas_src>
import functools

import jax
import jax.numpy as jnp
from jax.experimental import pallas as pl
from jax.experimental.pallas import tpu as pltpu

LANE = 128  # TPU lane width; pad the final-linear output dim to this.


def _num_tensorcores_per_chip():
    """2 on multi-TensorCore chips (v7x / v4 / v5p), else 1 (v5e / v6e)."""
    try:
        kind = jax.devices()[0].device_kind.lower()
    except Exception:
        return 1
    return 2 if any(t in kind for t in ("v7", "tpu7", "v4", "v5p")) else 1


def _gcn_fused_kernel(x_ref, adj_ref, w1_ref, b1_ref, w2_ref, b2_ref,
                      w3t_ref, b3_ref, o_ref, *, tm):
    """Fused 2x GraphConvolution + Linear for one row-tile of the output.

    x_ref   : (N, F)        bf16   node features (full)
    adj_ref : (N, N)        bf16   normalized adjacency (full)
    w1/w2   : bf16 weights;  b1/b2 : f32 (1, out) biases
    w3t_ref : (64, LANEpad) bf16   pre-transposed, lane-padded final weight
    b3_ref  : (1, LANEpad)  f32    lane-padded final bias
    o_ref   : (tm, LANEpad) f32    lane-dense output row tile
    """
    i = pl.program_id(0)
    row0 = pl.multiple_of(i * tm, tm)
    f32 = jnp.float32
    bdt = adj_ref.dtype  # bf16

    # ---- Layer 1 (full graph; layer 2's aggregation needs h1 for ALL nodes) --
    # support1 = x @ W1 ;  h1 = relu(adj @ support1 + b1)
    support1 = jnp.dot(x_ref[...], w1_ref[...], preferred_element_type=f32)
    h1 = jnp.dot(adj_ref[...], support1.astype(bdt), preferred_element_type=f32)
    h1 = jnp.maximum(h1 + b1_ref[...], 0.0)
    # dropout (eval mode) -> identity

    # ---- Layer 2: support2 over all nodes, aggregate only this row tile ----
    support2 = jnp.dot(h1.astype(bdt), w2_ref[...], preferred_element_type=f32)
    adj_tile = adj_ref[pl.ds(row0, tm), :]
    h2 = jnp.dot(adj_tile, support2.astype(bdt), preferred_element_type=f32)
    h2 = jnp.maximum(h2 + b2_ref[...], 0.0)
    # dropout (eval mode) -> identity

    # ---- Final nn.Linear: out = h2 @ W3^T + b3 (W3^T pre-transposed/padded) --
    out = jnp.dot(h2.astype(bdt), w3t_ref[...], preferred_element_type=f32)
    o_ref[...] = (out + b3_ref[...]).astype(o_ref.dtype)


def prepare_gcn_params(params):
    """One-time (per-model) prep, hoisted out of the per-forward path.

    Casts weights to bf16 and builds a lane-dense final linear: W3 [nclass, 64]
    -> transposed to [64, nclass] and zero-padded along lanes to [64, LANE];
    b3 -> (1, LANE).  Padded output columns are exactly zero.
    """
    bf16 = jnp.bfloat16
    nhid = params["w1"].shape[1]
    nh2 = params["w2"].shape[1]
    nclass, k3 = params["w3"].shape
    assert k3 == nh2
    ncls_pad = max(LANE, ((nclass + LANE - 1) // LANE) * LANE)

    w3t = jnp.zeros((nh2, ncls_pad), jnp.float32).at[:, :nclass].set(params["w3"].T)
    b3 = jnp.zeros((1, ncls_pad), jnp.float32).at[0, :nclass].set(params["b3"])
    return {
        "w1": params["w1"].astype(bf16),
        "b1": params["b1"].reshape(1, nhid).astype(jnp.float32),
        "w2": params["w2"].astype(bf16),
        "b2": params["b2"].reshape(1, nh2).astype(jnp.float32),
        "w3t": w3t.astype(bf16),
        "b3": b3,
        "nclass": nclass,
    }


def gcn_forward(x_b, adj_b, prep, *, num_row_tiles=None):
    """Fused GCN forward.  x_b / adj_b must already be bf16 (hoisted cast)."""
    num_nodes, nfeat = x_b.shape
    nhid = prep["w1"].shape[1]
    nh2 = prep["w2"].shape[1]
    ncls_pad = prep["w3t"].shape[1]
    nclass = prep["nclass"]

    if num_row_tiles is None:
        num_row_tiles = _num_tensorcores_per_chip()
    # One row tile per TensorCore (never tie the grid to N: every extra grid
    # step recomputes the shared layer-1 prefix).  Fall back to a single tile
    # when N doesn't split into 8-aligned pieces.
    if num_row_tiles > 1 and num_nodes % (8 * num_row_tiles) == 0:
        tm = num_nodes // num_row_tiles
    else:
        tm = num_nodes
    grid = num_nodes // tm

    kernel = functools.partial(_gcn_fused_kernel, tm=tm)
    args = (x_b, adj_b, prep["w1"], prep["b1"], prep["w2"], prep["b2"],
            prep["w3t"], prep["b3"])

    def build_and_call(single_buffer):
        def inv(shape):
            # Grid-invariant input (constant index_map): single-buffer it so the
            # dominant (N, N) adj block isn't held twice in VMEM.
            if single_buffer:
                return pl.BlockSpec(shape, lambda i: (0, 0),
                                    pipeline_mode=pl.Buffered(1))
            return pl.BlockSpec(shape, lambda i: (0, 0))

        return pl.pallas_call(
            kernel,
            out_shape=jax.ShapeDtypeStruct((num_nodes, ncls_pad), jnp.float32),
            grid_spec=pltpu.PrefetchScalarGridSpec(
                num_scalar_prefetch=0,
                grid=(grid,),
                in_specs=[
                    inv((num_nodes, nfeat)),        # x
                    inv((num_nodes, num_nodes)),    # adj
                    inv((nfeat, nhid)),             # w1
                    inv((1, nhid)),                 # b1
                    inv((nhid, nh2)),               # w2
                    inv((1, nh2)),                  # b2
                    inv((nh2, ncls_pad)),           # w3^T (lane-padded)
                    inv((1, ncls_pad)),             # b3   (lane-padded)
                ],
                out_specs=pl.BlockSpec((tm, ncls_pad), lambda i: (i, 0)),
            ),
            compiler_params=pltpu.CompilerParams(
                dimension_semantics=("parallel",)),
        )(*args)

    try:
        out_pad = build_and_call(single_buffer=True)
    except Exception:
        # BlockSpec(pipeline_mode=pl.Buffered(1)) unsupported on this jax ->
        # fall back to default double-buffering (identical numerics).
        out_pad = build_and_call(single_buffer=False)

    # Drop the zero lane-padding (tiny slice, outside the kernel).
    return out_pad[:, :nclass]


def init_params(key, nfeat, nhid, nclass):
    ks = jax.random.split(key, 6)

    def unif(k, shape, fan_out):
        stdv = 1.0 / jnp.sqrt(float(fan_out))
        return jax.random.uniform(k, shape, jnp.float32, -stdv, stdv)

    return {
        # gc1: GraphConvolution(nfeat, nhid)
        "w1": unif(ks[0], (nfeat, nhid), nhid),
        "b1": unif(ks[1], (nhid,), nhid),
        # gc2: GraphConvolution(nhid, 64)
        "w2": unif(ks[2], (nhid, 64), 64),
        "b2": unif(ks[3], (64,), 64),
        # Li: nn.Linear(64, nclass) -> weight [nclass, 64], bias [nclass]
        "w3": unif(ks[4], (nclass, 64), 64),
        "b3": unif(ks[5], (nclass,), 64),
    }


if __name__ == "__main__":
    key = jax.random.PRNGKey(0)
    k_x, k_a, k_p = jax.random.split(key, 3)

    num_nodes, nfeat, nhid, nclass = 256, 128, 64, 16

    x = jax.random.normal(k_x, (num_nodes, nfeat), jnp.float32)
    # symmetric row-normalized-ish adjacency (dense, deterministic)
    a_raw = (jax.random.uniform(k_a, (num_nodes, num_nodes)) < 0.05).astype(jnp.float32)
    adj = a_raw + a_raw.T + jnp.eye(num_nodes, dtype=jnp.float32)
    adj = adj / jnp.sum(adj, axis=1, keepdims=True)

    params = init_params(k_p, nfeat, nhid, nclass)

    # One-time prep (hoisted out of the per-forward path): bf16 casts and the
    # lane-dense W3^T / b3 padding.
    x_b = x.astype(jnp.bfloat16)
    adj_b = adj.astype(jnp.bfloat16)
    prep = prepare_gcn_params(params)

    out = gcn_forward(x_b, adj_b, prep)
    jax.block_until_ready(out)

    # reference check in plain JAX (f32)
    def ref(xv, adjv, p):
        h = jnp.maximum(adjv @ (xv @ p["w1"]) + p["b1"], 0.0)
        h = jnp.maximum(adjv @ (h @ p["w2"]) + p["b2"], 0.0)
        return h @ p["w3"].T + p["b3"]

    ref_out = ref(x, adj, params)
    assert out.shape == (num_nodes, nclass)
    # bf16 MXU inputs (f32 accumulation) -> looser tolerance than pure-f32 path.
    assert jnp.allclose(out, ref_out, atol=5e-2, rtol=5e-2), (
        float(jnp.max(jnp.abs(out - ref_out))))

    print("KERNEL_OK")
</pallas_src>

<mosaic_0001>
module attributes {stable_mosaic.version = 11 : i64} {
  func.func @_gcn_fused_kernel(%arg0: i32, %arg1: memref<256x128xbf16, #tpu.memory_space<vmem>>, %arg2: memref<256x256xbf16, #tpu.memory_space<vmem>>, %arg3: memref<128x64xbf16, #tpu.memory_space<vmem>>, %arg4: memref<1x64xf32, #tpu.memory_space<vmem>>, %arg5: memref<64x64xbf16, #tpu.memory_space<vmem>>, %arg6: memref<1x64xf32, #tpu.memory_space<vmem>>, %arg7: memref<64x128xbf16, #tpu.memory_space<vmem>>, %arg8: memref<1x128xf32, #tpu.memory_space<vmem>>, %arg9: memref<256x128xf32, #tpu.memory_space<vmem>>) attributes {dimension_semantics = [#tpu.dimension_semantics<parallel>], iteration_bounds = array<i64: 1>, scalar_prefetch = 0 : i64, scratch_operands = 0 : i64, tpu.core_type = #tpu.core_type<tc>, window_params = [{pipeline_mode = #tpu.pipeline_mode<synchronous>, transform_indices = @transform_0, window_bounds = array<i64: 256, 128>}, {pipeline_mode = #tpu.pipeline_mode<synchronous>, transform_indices = @transform_1, window_bounds = array<i64: 256, 256>}, {pipeline_mode = #tpu.pipeline_mode<synchronous>, transform_indices = @transform_2, window_bounds = array<i64: 128, 64>}, {pipeline_mode = #tpu.pipeline_mode<synchronous>, transform_indices = @transform_3, window_bounds = array<i64: 1, 64>}, {pipeline_mode = #tpu.pipeline_mode<synchronous>, transform_indices = @transform_4, window_bounds = array<i64: 64, 64>}, {pipeline_mode = #tpu.pipeline_mode<synchronous>, transform_indices = @transform_5, window_bounds = array<i64: 1, 64>}, {pipeline_mode = #tpu.pipeline_mode<synchronous>, transform_indices = @transform_6, window_bounds = array<i64: 64, 128>}, {pipeline_mode = #tpu.pipeline_mode<synchronous>, transform_indices = @transform_7, window_bounds = array<i64: 1, 128>}, {transform_indices = @transform_8, window_bounds = array<i64: 256, 128>}]} {
    %c256_i32 = arith.constant 256 : i32
    %0 = arith.muli %arg0, %c256_i32 : i32
    %1 = tpu.assume_multiple %0, 256 : i32
    %c0 = arith.constant 0 : index
    %c0_0 = arith.constant 0 : index
    %2 = vector.load %arg1[%c0, %c0_0] : memref<256x128xbf16, #tpu.memory_space<vmem>>, vector<256x128xbf16>
    %c0_1 = arith.constant 0 : index
    %c0_2 = arith.constant 0 : index
    %3 = vector.load %arg3[%c0_1, %c0_2] : memref<128x64xbf16, #tpu.memory_space<vmem>>, vector<128x64xbf16>
    %cst = arith.constant dense<0.000000e+00> : vector<256x64xf32>
    %4 = tpu.matmul %2, %3, %cst {dimension_numbers = #tpu.dot_dimension_numbers<[1], [0], [0], [1], [0, 0, 1, 1], [], []>} : vector<256x128xbf16>, vector<128x64xbf16>, vector<256x64xf32> -> vector<256x64xf32>
    %c0_3 = arith.constant 0 : index
    %c0_4 = arith.constant 0 : index
    %5 = vector.load %arg2[%c0_3, %c0_4] : memref<256x256xbf16, #tpu.memory_space<vmem>>, vector<256x256xbf16>
    %6 = arith.truncf %4 : vector<256x64xf32> to vector<256x64xbf16>
    %cst_5 = arith.constant dense<0.000000e+00> : vector<256x64xf32>
    %7 = tpu.matmul %5, %6, %cst_5 {dimension_numbers = #tpu.dot_dimension_numbers<[1], [0], [0], [1], [0, 0, 1, 1], [], []>} : vector<256x256xbf16>, vector<256x64xbf16>, vector<256x64xf32> -> vector<256x64xf32>
    %c0_6 = arith.constant 0 : index
    %c0_7 = arith.constant 0 : index
    %8 = vector.load %arg4[%c0_6, %c0_7] : memref<1x64xf32, #tpu.memory_space<vmem>>, vector<1x64xf32>
    %9 = vector.broadcast %8 : vector<1x64xf32> to vector<256x64xf32>
    %10 = arith.addf %7, %9 : vector<256x64xf32>
    %cst_8 = arith.constant 0.000000e+00 : f32
    %11 = vector.broadcast %cst_8 : f32 to vector<256x64xf32>
    %12 = arith.maximumf %10, %11 : vector<256x64xf32>
    %13 = arith.truncf %12 : vector<256x64xf32> to vector<256x64xbf16>
    %c0_9 = arith.constant 0 : index
    %c0_10 = arith.constant 0 : index
    %14 = vector.load %arg5[%c0_9, %c0_10] : memref<64x64xbf16, #tpu.memory_space<vmem>>, vector<64x64xbf16>
    %cst_11 = arith.constant dense<0.000000e+00> : vector<256x64xf32>
    %15 = tpu.matmul %13, %14, %cst_11 {dimension_numbers = #tpu.dot_dimension_numbers<[1], [0], [0], [1], [0, 0, 1, 1], [], []>} : vector<256x64xbf16>, vector<64x64xbf16>, vector<256x64xf32> -> vector<256x64xf32>
    %16 = arith.index_cast %1 : i32 to index
    %c0_12 = arith.constant 0 : index
    %17 = vector.load %arg2[%16, %c0_12] : memref<256x256xbf16, #tpu.memory_space<vmem>>, vector<256x256xbf16>
    %18 = arith.truncf %15 : vector<256x64xf32> to vector<256x64xbf16>
    %cst_13 = arith.constant dense<0.000000e+00> : vector<256x64xf32>
    %19 = tpu.matmul %17, %18, %cst_13 {dimension_numbers = #tpu.dot_dimension_numbers<[1], [0], [0], [1], [0, 0, 1, 1], [], []>} : vector<256x256xbf16>, vector<256x64xbf16>, vector<256x64xf32> -> vector<256x64xf32>
    %c0_14 = arith.constant 0 : index
    %c0_15 = arith.constant 0 : index
    %20 = vector.load %arg6[%c0_14, %c0_15] : memref<1x64xf32, #tpu.memory_space<vmem>>, vector<1x64xf32>
    %21 = vector.broadcast %20 : vector<1x64xf32> to vector<256x64xf32>
    %22 = arith.addf %19, %21 : vector<256x64xf32>
    %cst_16 = arith.constant 0.000000e+00 : f32
    %23 = vector.broadcast %cst_16 : f32 to vector<256x64xf32>
    %24 = arith.maximumf %22, %23 : vector<256x64xf32>
    %25 = arith.truncf %24 : vector<256x64xf32> to vector<256x64xbf16>
    %c0_17 = arith.constant 0 : index
    %c0_18 = arith.constant 0 : index
    %26 = vector.load %arg7[%c0_17, %c0_18] : memref<64x128xbf16, #tpu.memory_space<vmem>>, vector<64x128xbf16>
    %cst_19 = arith.constant dense<0.000000e+00> : vector<256x128xf32>
    %27 = tpu.matmul %25, %26, %cst_19 {dimension_numbers = #tpu.dot_dimension_numbers<[1], [0], [0], [1], [0, 0, 1, 1], [], []>} : vector<256x64xbf16>, vector<64x128xbf16>, vector<256x128xf32> -> vector<256x128xf32>
    %c0_20 = arith.constant 0 : index
    %c0_21 = arith.constant 0 : index
    %28 = vector.load %arg8[%c0_20, %c0_21] : memref<1x128xf32, #tpu.memory_space<vmem>>, vector<1x128xf32>
    %29 = vector.broadcast %28 : vector<1x128xf32> to vector<256x128xf32>
    %30 = arith.addf %27, %29 : vector<256x128xf32>
    %c0_22 = arith.constant 0 : index
    %c0_23 = arith.constant 0 : index
    %31 = vector.load %arg9[%c0_22, %c0_23] : memref<256x128xf32, #tpu.memory_space<vmem>>, vector<256x128xf32>
    tpu.vector_store %arg9[%c0_22, %c0_23], %30 {strides = array<i32>} : memref<256x128xf32, #tpu.memory_space<vmem>>, vector<256x128xf32>,
    return
  }
  func.func @transform_0(%arg0: i32) -> (i32, i32) {
    %c0_i32 = arith.constant 0 : i32
    %c0_i32_0 = arith.constant 0 : i32
    %c0_i32_1 = arith.constant 0 : i32
    return %c0_i32, %c0_i32_0 : i32, i32
  }
  func.func @transform_1(%arg0: i32) -> (i32, i32) {
    %c0_i32 = arith.constant 0 : i32
    %c0_i32_0 = arith.constant 0 : i32
    %c0_i32_1 = arith.constant 0 : i32
    return %c0_i32, %c0_i32_0 : i32, i32
  }
  func.func @transform_2(%arg0: i32) -> (i32, i32) {
    %c0_i32 = arith.constant 0 : i32
    %c0_i32_0 = arith.constant 0 : i32
    %c0_i32_1 = arith.constant 0 : i32
    return %c0_i32, %c0_i32_0 : i32, i32
  }
  func.func @transform_3(%arg0: i32) -> (i32, i32) {
    %c0_i32 = arith.constant 0 : i32
    %c0_i32_0 = arith.constant 0 : i32
    %c0_i32_1 = arith.constant 0 : i32
    return %c0_i32, %c0_i32_0 : i32, i32
  }
  func.func @transform_4(%arg0: i32) -> (i32, i32) {
    %c0_i32 = arith.constant 0 : i32
    %c0_i32_0 = arith.constant 0 : i32
    %c0_i32_1 = arith.constant 0 : i32
    return %c0_i32, %c0_i32_0 : i32, i32
  }
  func.func @transform_5(%arg0: i32) -> (i32, i32) {
    %c0_i32 = arith.constant 0 : i32
    %c0_i32_0 = arith.constant 0 : i32
    %c0_i32_1 = arith.constant 0 : i32
    return %c0_i32, %c0_i32_0 : i32, i32
  }
  func.func @transform_6(%arg0: i32) -> (i32, i32) {
    %c0_i32 = arith.constant 0 : i32
    %c0_i32_0 = arith.constant 0 : i32
    %c0_i32_1 = arith.constant 0 : i32
    return %c0_i32, %c0_i32_0 : i32, i32
  }
  func.func @transform_7(%arg0: i32) -> (i32, i32) {
    %c0_i32 = arith.constant 0 : i32
    %c0_i32_0 = arith.constant 0 : i32
    %c0_i32_1 = arith.constant 0 : i32
    return %c0_i32, %c0_i32_0 : i32, i32
  }
  func.func @transform_8(%arg0: i32) -> (i32, i32) {
    %c0_i32 = arith.constant 0 : i32
    %c0_i32_0 = arith.constant 0 : i32
    return %arg0, %c0_i32 : i32, i32
  }
}

module attributes {stable_mosaic.version = 11 : i64} {
  func.func @_gcn_fused_kernel(%arg0: i32, %arg1: memref<256x128xbf16, #tpu.memory_space<vmem>>, %arg2: memref<256x256xbf16, #tpu.memory_space<vmem>>, %arg3: memref<128x64xbf16, #tpu.memory_space<vmem>>, %arg4: memref<1x64xf32, #tpu.memory_space<vmem>>, %arg5: memref<64x64xbf16, #tpu.memory_space<vmem>>, %arg6: memref<1x64xf32, #tpu.memory_space<vmem>>, %arg7: memref<64x128xbf16, #tpu.memory_space<vmem>>, %arg8: memref<1x128xf32, #tpu.memory_space<vmem>>, %arg9: memref<256x128xf32, #tpu.memory_space<vmem>>) attributes {dimension_semantics = [#tpu.dimension_semantics<parallel>], iteration_bounds = array<i64: 1>, scalar_prefetch = 0 : i64, scratch_operands = 0 : i64, tpu.core_type = #tpu.core_type<tc>, window_params = [{pipeline_mode = #tpu.pipeline_mode<synchronous>, transform_indices = @transform_0, window_bounds = array<i64: 256, 128>}, {pipeline_mode = #tpu.pipeline_mode<synchronous>, transform_indices = @transform_1, window_bounds = array<i64: 256, 256>}, {pipeline_mode = #tpu.pipeline_mode<synchronous>, transform_indices = @transform_2, window_bounds = array<i64: 128, 64>}, {pipeline_mode = #tpu.pipeline_mode<synchronous>, transform_indices = @transform_3, window_bounds = array<i64: 1, 64>}, {pipeline_mode = #tpu.pipeline_mode<synchronous>, transform_indices = @transform_4, window_bounds = array<i64: 64, 64>}, {pipeline_mode = #tpu.pipeline_mode<synchronous>, transform_indices = @transform_5, window_bounds = array<i64: 1, 64>}, {pipeline_mode = #tpu.pipeline_mode<synchronous>, transform_indices = @transform_6, window_bounds = array<i64: 64, 128>}, {pipeline_mode = #tpu.pipeline_mode<synchronous>, transform_indices = @transform_7, window_bounds = array<i64: 1, 128>}, {transform_indices = @transform_8, window_bounds = array<i64: 256, 128>}]} {
    %c256_i32 = arith.constant 256 : i32
    %0 = arith.muli %arg0, %c256_i32 : i32
    %1 = tpu.assume_multiple %0, 256 : i32
    %c0 = arith.constant 0 : index
    %c0_0 = arith.constant 0 : index
    %2 = vector.load %arg1[%c0, %c0_0] : memref<256x128xbf16, #tpu.memory_space<vmem>>, vector<256x128xbf16>
    %c0_1 = arith.constant 0 : index
    %c0_2 = arith.constant 0 : index
    %3 = vector.load %arg3[%c0_1, %c0_2] : memref<128x64xbf16, #tpu.memory_space<vmem>>, vector<128x64xbf16>
    %cst = arith.constant dense<0.000000e+00> : vector<256x64xf32>
    %4 = tpu.matmul %2, %3, %cst {dimension_numbers = #tpu.dot_dimension_numbers<[1], [0], [0], [1], [0, 0, 1, 1], [], []>} : vector<256x128xbf16>, vector<128x64xbf16>, vector<256x64xf32> -> vector<256x64xf32>
    %c0_3 = arith.constant 0 : index
    %c0_4 = arith.constant 0 : index
    %5 = vector.load %arg2[%c0_3, %c0_4] : memref<256x256xbf16, #tpu.memory_space<vmem>>, vector<256x256xbf16>
    %6 = arith.truncf %4 : vector<256x64xf32> to vector<256x64xbf16>
    %cst_5 = arith.constant dense<0.000000e+00> : vector<256x64xf32>
    %7 = tpu.matmul %5, %6, %cst_5 {dimension_numbers = #tpu.dot_dimension_numbers<[1], [0], [0], [1], [0, 0, 1, 1], [], []>} : vector<256x256xbf16>, vector<256x64xbf16>, vector<256x64xf32> -> vector<256x64xf32>
    %c0_6 = arith.constant 0 : index
    %c0_7 = arith.constant 0 : index
    %8 = vector.load %arg4[%c0_6, %c0_7] : memref<1x64xf32, #tpu.memory_space<vmem>>, vector<1x64xf32>
    %9 = vector.broadcast %8 : vector<1x64xf32> to vector<256x64xf32>
    %10 = arith.addf %7, %9 : vector<256x64xf32>
    %cst_8 = arith.constant 0.000000e+00 : f32
    %11 = vector.broadcast %cst_8 : f32 to vector<256x64xf32>
    %12 = arith.maximumf %10, %11 : vector<256x64xf32>
    %13 = arith.truncf %12 : vector<256x64xf32> to vector<256x64xbf16>
    %c0_9 = arith.constant 0 : index
    %c0_10 = arith.constant 0 : index
    %14 = vector.load %arg5[%c0_9, %c0_10] : memref<64x64xbf16, #tpu.memory_space<vmem>>, vector<64x64xbf16>
    %cst_11 = arith.constant dense<0.000000e+00> : vector<256x64xf32>
    %15 = tpu.matmul %13, %14, %cst_11 {dimension_numbers = #tpu.dot_dimension_numbers<[1], [0], [0], [1], [0, 0, 1, 1], [], []>} : vector<256x64xbf16>, vector<64x64xbf16>, vector<256x64xf32> -> vector<256x64xf32>
    %16 = arith.index_cast %1 : i32 to index
    %c0_12 = arith.constant 0 : index
    %17 = vector.load %arg2[%16, %c0_12] : memref<256x256xbf16, #tpu.memory_space<vmem>>, vector<256x256xbf16>
    %18 = arith.truncf %15 : vector<256x64xf32> to vector<256x64xbf16>
    %cst_13 = arith.constant dense<0.000000e+00> : vector<256x64xf32>
    %19 = tpu.matmul %17, %18, %cst_13 {dimension_numbers = #tpu.dot_dimension_numbers<[1], [0], [0], [1], [0, 0, 1, 1], [], []>} : vector<256x256xbf16>, vector<256x64xbf16>, vector<256x64xf32> -> vector<256x64xf32>
    %c0_14 = arith.constant 0 : index
    %c0_15 = arith.constant 0 : index
    %20 = vector.load %arg6[%c0_14, %c0_15] : memref<1x64xf32, #tpu.memory_space<vmem>>, vector<1x64xf32>
    %21 = vector.broadcast %20 : vector<1x64xf32> to vector<256x64xf32>
    %22 = arith.addf %19, %21 : vector<256x64xf32>
    %cst_16 = arith.constant 0.000000e+00 : f32
    %23 = vector.broadcast %cst_16 : f32 to vector<256x64xf32>
    %24 = arith.maximumf %22, %23 : vector<256x64xf32>
    %25 = arith.truncf %24 : vector<256x64xf32> to vector<256x64xbf16>
    %c0_17 = arith.constant 0 : index
    %c0_18 = arith.constant 0 : index
    %26 = vector.load %arg7[%c0_17, %c0_18] : memref<64x128xbf16, #tpu.memory_space<vmem>>, vector<64x128xbf16>
    %cst_19 = arith.constant dense<0.000000e+00> : vector<256x128xf32>
    %27 = tpu.matmul %25, %26, %cst_19 {dimension_numbers = #tpu.dot_dimension_numbers<[1], [0], [0], [1], [0, 0, 1, 1], [], []>} : vector<256x64xbf16>, vector<64x128xbf16>, vector<256x128xf32> -> vector<256x128xf32>
    %c0_20 = arith.constant 0 : index
    %c0_21 = arith.constant 0 : index
    %28 = vector.load %arg8[%c0_20, %c0_21] : memref<1x128xf32, #tpu.memory_space<vmem>>, vector<1x128xf32>
    %29 = vector.broadcast %28 : vector<1x128xf32> to vector<256x128xf32>
    %30 = arith.addf %27, %29 : vector<256x128xf32>
    %c0_22 = arith.constant 0 : index
    %c0_23 = arith.constant 0 : index
    %31 = vector.load %arg9[%c0_22, %c0_23] : memref<256x128xf32, #tpu.memory_space<vmem>>, vector<256x128xf32>
    tpu.vector_store %arg9[%c0_22, %c0_23], %30 {strides = array<i32>} : memref<256x128xf32, #tpu.memory_space<vmem>>, vector<256x128xf32>,
    return
  }
  func.func @transform_0(%arg0: i32) -> (i32, i32) {
    %c0_i32 = arith.constant 0 : i32
    %c0_i32_0 = arith.constant 0 : i32
    %c0_i32_1 = arith.constant 0 : i32
    return %c0_i32, %c0_i32_0 : i32, i32
  }
  func.func @transform_1(%arg0: i32) -> (i32, i32) {
    %c0_i32 = arith.constant 0 : i32
    %c0_i32_0 = arith.constant 0 : i32
    %c0_i32_1 = arith.constant 0 : i32
    return %c0_i32, %c0_i32_0 : i32, i32
  }
  func.func @transform_2(%arg0: i32) -> (i32, i32) {
    %c0_i32 = arith.constant 0 : i32
    %c0_i32_0 = arith.constant 0 : i32
    %c0_i32_1 = arith.constant 0 : i32
    return %c0_i32, %c0_i32_0 : i32, i32
  }
  func.func @transform_3(%arg0: i32) -> (i32, i32) {
    %c0_i32 = arith.constant 0 : i32
    %c0_i32_0 = arith.constant 0 : i32
    %c0_i32_1 = arith.constant 0 : i32
    return %c0_i32, %c0_i32_0 : i32, i32
  }
  func.func @transform_4(%arg0: i32) -> (i32, i32) {
    %c0_i32 = arith.constant 0 : i32
    %c0_i32_0 = arith.constant 0 : i32
    %c0_i32_1 = arith.constant 0 : i32
    return %c0_i32, %c0_i32_0 : i32, i32
  }
  func.func @transform_5(%arg0: i32) -> (i32, i32) {
    %c0_i32 = arith.constant 0 : i32
    %c0_i32_0 = arith.constant 0 : i32
    %c0_i32_1 = arith.constant 0 : i32
    return %c0_i32, %c0_i32_0 : i32, i32
  }
  func.func @transform_6(%arg0: i32) -> (i32, i32) {
    %c0_i32 = arith.constant 0 : i32
    %c0_i32_0 = arith.constant 0 : i32
    %c0_i32_1 = arith.constant 0 : i32
    return %c0_i32, %c0_i32_0 : i32, i32
  }
  func.func @transform_7(%arg0: i32) -> (i32, i32) {
    %c0_i32 = arith.constant 0 : i32
    %c0_i32_0 = arith.constant 0 : i32
    %c0_i32_1 = arith.constant 0 : i32
    return %c0_i32, %c0_i32_0 : i32, i32
  }
  func.func @transform_8(%arg0: i32) -> (i32, i32) {
    %c0_i32 = arith.constant 0 : i32
    %c0_i32_0 = arith.constant 0 : i32
    return %arg0, %c0_i32 : i32, i32
  }
}

</mosaic_0001>

<bundles_post_ra>
// kernel: tpu_custom_call.1
= control target key start
LH: loop header
LB: loop body
LE: loop exit
PB: predicated region body
PF: predicated region fallthrough
CT: control target
= control target key end

     0   :  { %13 = vsyncpa [#allocation3], 0  ;;  %s2919_s0 = inlined_call_operand.hbm [shape: bf16[256,128], index: 0, kind: input, shape index: {}]   ;;  %s2920_s1 = inlined_call_operand.hbm [shape: bf16[256,256], index: 1, kind: input, shape index: {}]   ;;  %s2921_s2 = inlined_call_operand.vmem [shape: bf16[128,64], index: 2, kind: input, shape index: {}]   ;;  %s2922_s3 = inlined_call_operand.vmem [shape: f32[1,64], index: 3, kind: input, shape index: {}]   ;;  %s2923_s4 = inlined_call_operand.vmem [shape: bf16[64,64], index: 4, kind: input, shape index: {}]   ;;  %s2924_s5 = inlined_call_operand.vmem [shape: f32[1,64], index: 5, kind: input, shape index: {}]   ;;  %s2925_s6 = inlined_call_operand.vmem [shape: bf16[64,128], index: 6, kind: input, shape index: {}]   ;;  %s2926_s7 = inlined_call_operand.vmem [shape: f32[1,128], index: 7, kind: input, shape index: {}]   ;;  %s2927_s8 = inlined_call_operand.hbm [shape: f32[256,128], index: 8, kind: output, shape index: {}]  }
   0x1   :  { %14 = vsyncpa [#allocation6], 0 }
   0x2   :  { %15 = vsyncpa [#allocation4], 0  ;;  %s2524_s27 = smov [#allocation2]  }
   0x3   :  { %s21_s28 = sshll.u32 %s2524_s27, 4  ;;  %s22_s28 = int_to_ptr.vmem [resolvable:$true] %s21_s28 }
   0x4   :  { %s2466_s29 = scalar_lea.vmem %s22_s28, 2048  ;;  %p2471_p1 = scmp.lt.s32.totalorder %s22_s28, %s22_s28 }
   0x5   :  { %p2467_p0 = scmp.ne.s32.totalorder %s22_s28, %s2466_s29  ;;  %p2472_p2 = scmp.lt.s32.totalorder %s2466_s29, %s2466_s29 }
   0x7   :  { %p2473_p3 = por %p2472_p2, %p2471_p1 }
   0x9   :  { %p2474_p4 = pnand %p2473_p3, %p2467_p0 }
   0xb   :  { %2477 = shalt.err (!%p2474_p4)
}
   0xc   :  { %s2525_s30 = smov 64   ;;  %s2526_s9 = smov 4  }
   0xd   :  { %27 = dma.hbm_to_vmem [thread:$0]  %s2919_s0, 2048, %s22_s28, [#allocation3], %s2525_s30, %s2525_s30, %s2526_s9  }
   0xe   :  { %s2527_s12 = smov [#allocation5]  }
   0xf   :  { %s33_s13 = sshll.u32 %s2527_s12, 4  ;;  %s34_s13 = int_to_ptr.vmem [resolvable:$true] %s33_s13 }
  0x10   :  { %s2486_s14 = scalar_lea.vmem %s34_s13, 4096  ;;  %p2491_p6 = scmp.lt.s32.totalorder %s34_s13, %s34_s13 }
  0x11   :  { %p2487_p5 = scmp.ne.s32.totalorder %s34_s13, %s2486_s14  ;;  %p2492_p7 = scmp.lt.s32.totalorder %s2486_s14, %s2486_s14 }
  0x13   :  { %p2493_p8 = por %p2492_p7, %p2491_p6 }
  0x15   :  { %p2494_p9 = pnand %p2493_p8, %p2487_p5 }
  0x17   :  { %2497 = shalt.err (!%p2494_p9)
}
  0x18   :  { %s2528_s15 = smov 128   ;;  %s2529_s16 = smov 8  }
  0x19   :  { %39 = dma.hbm_to_vmem [thread:$0]  %s2920_s1, 4096, %s34_s13, [#allocation6], %s2528_s15, %s2528_s15, %s2529_s16  }
  0x1a   :  { %2518 = dma.done.wait [#allocation3], 2048  }
  0x1b   :  { %2519 = vsyncadd [#allocation3], 4294965248 }
  0x1c   :  { %2520 = dma.done.wait [#allocation6], 4096  }
  0x1d   :  { %2521 = vsyncadd [#allocation6], 4294963200  ;;  %v2378_v0 = vld [vmem:[%s2921_s2 + $0x38] sm:$0xff]   ;;  %v2379_v1 = vld [vmem:[%s2921_s2 + $0x30] sm:$0xff]   ;;  %vm869_vm0 = vcmask 523264  }
  0x1e   :  { %2227 = vmatprep.subr.bf16.mxu0 %v2378_v0  ;;  %2355 = vmatprep.subr.bf16.mxu1 %v2378_v0  ;;  %v2380_v2 = vld [vmem:[%s2921_s2 + $0x28] sm:$0xff]   ;;  %v2381_v3 = vld [vmem:[%s2921_s2 + $0x20] sm:$0xff]   ;;  %v2382_v6 = vld [vmem:[%s2921_s2 + $0x18] sm:$0xff]  }
  0x1f   :  { %2228 = vmatpush3.bf16.msra.mxu0 %v2378_v0  ;;  %2363 = vmatpush3.bf16.msra.mxu1 %v2378_v0  ;;  %v2386_v4 = vld [vmem:[#allocation2] sm:$0xff]   ;;  %v2383_v7 = vld [vmem:[%s2921_s2 + $0x10] sm:$0xff]   ;;  %v2384_v8 = vld [vmem:[%s2921_s2 + $0x8] sm:$0xff]  }
  0x20   :  { %2229 = vmatprep.subr.bf16.mxu0 %v2379_v1  ;;  %2356 = vmatprep.subr.bf16.mxu1 %v2379_v1  ;;  %v2387_v5 = vld [vmem:[#allocation2 + $0x40] sm:$0xff]   ;;  %v2388_v10 = vld [vmem:[#allocation2 + $0x8] sm:$0xff]   ;;  %v2390_v12 = vld [vmem:[#allocation2 + $0x10] sm:$0xff]  }
  0x21   :  { %2243 = vmatprep.mubr.bf16.mxu0 %v2386_v4  ;;  %2259 = vmatprep.mubr.bf16.mxu1 %v2387_v5  ;;  %v2385_v9 = vld [vmem:[%s2921_s2] sm:$0xff]   ;;  %v2389_v11 = vld [vmem:[#allocation2 + $0x48] sm:$0xff]   ;;  %v2391_v13 = vld [vmem:[#allocation2 + $0x50] sm:$0xff]  }
  0x22   :  { %v2392_v14 = vld [vmem:[#allocation2 + $0x18] sm:$0xff]   ;;  %v2394_v16 = vld [vmem:[#allocation2 + $0x20] sm:$0xff]   ;;  %v2396_v18 = vld [vmem:[#allocation2 + $0x28] sm:$0xff]  }
  0x23   :  { %2230 = vmatpush3.bf16.msra.mxu0 %v2379_v1  ;;  %2364 = vmatpush3.bf16.msra.mxu1 %v2379_v1  ;;  %v2393_v15 = vld [vmem:[#allocation2 + $0x58] sm:$0xff]   ;;  %v2395_v17 = vld [vmem:[#allocation2 + $0x60] sm:$0xff]   ;;  %v2397_v19 = vld [vmem:[#allocation2 + $0x68] sm:$0xff]  }
  0x24   :  { %2231 = vmatprep.subr.bf16.mxu0 %v2380_v2  ;;  %2357 = vmatprep.subr.bf16.mxu1 %v2380_v2  ;;  %v2398_v20 = vld [vmem:[#allocation2 + $0x30] sm:$0xff]   ;;  %v2400_v22 = vld [vmem:[#allocation2 + $0x38] sm:$0xff]   ;;  %v2609_v24 = vld [vmem:[#allocation5 + $0x4] ss:$8 sps:$4 sm:$0xff]  }
  0x25   :  { %v2399_v21 = vld [vmem:[#allocation2 + $0x70] sm:$0xff]   ;;  %v2401_v23 = vld [vmem:[#allocation2 + $0x78] sm:$0xff]  }
  0x27   :  { %2232 = vmatpush3.bf16.msra.mxu0 %v2380_v2  ;;  %2365 = vmatpush3.bf16.msra.mxu1 %v2380_v2 }
  0x28   :  { %2233 = vmatprep.subr.bf16.mxu0 %v2381_v3  ;;  %2358 = vmatprep.subr.bf16.mxu1 %v2381_v3 }
  0x2b   :  { %2234 = vmatpush3.bf16.msra.mxu0 %v2381_v3  ;;  %2366 = vmatpush3.bf16.msra.mxu1 %v2381_v3 }
  0x2c   :  { %2235 = vmatprep.subr.bf16.mxu0 %v2382_v6  ;;  %2359 = vmatprep.subr.bf16.mxu1 %v2382_v6 }
  0x2f   :  { %2236 = vmatpush3.bf16.msra.mxu0 %v2382_v6  ;;  %2367 = vmatpush3.bf16.msra.mxu1 %v2382_v6 }
  0x30   :  { %2237 = vmatprep.subr.bf16.mxu0 %v2383_v7  ;;  %2360 = vmatprep.subr.bf16.mxu1 %v2383_v7 }
  0x33   :  { %2238 = vmatpush3.bf16.msra.mxu0 %v2383_v7  ;;  %2368 = vmatpush3.bf16.msra.mxu1 %v2383_v7 }
  0x34   :  { %2239 = vmatprep.subr.bf16.mxu0 %v2384_v8  ;;  %2361 = vmatprep.subr.bf16.mxu1 %v2384_v8 }
  0x37   :  { %2240 = vmatpush3.bf16.msra.mxu0 %v2384_v8  ;;  %2369 = vmatpush3.bf16.msra.mxu1 %v2384_v8 }
  0x38   :  { %2241 = vmatprep.subr.bf16.mxu0 %v2385_v9  ;;  %2362 = vmatprep.subr.bf16.mxu1 %v2385_v9 }
  0x3b   :  { %2242 = vmatpush3.bf16.msra.mxu0 %v2385_v9  ;;  %2370 = vmatpush3.bf16.msra.mxu1 %v2385_v9  ;;  %v2612_v9 = vld [vmem:[#allocation5] ss:$8 sps:$4 sm:$0xff]  }
  0x3e   :  { %2244 = vmatmul.mubr.bf16.vlgmr.msra.gmra.mxu0 %v2388_v10  ;;  %2260 = vmatmul.mubr.bf16.vlgmr.msra.gmra.mxu1 %v2389_v11  ;;  %v2614_v10 = vld [vmem:[#allocation5 + $0x14] ss:$8 sps:$4 sm:$0xff]   ;;  %v2618_v11 = vld [vmem:[#allocation5 + $0x10] ss:$8 sps:$4 sm:$0xff]  }
  0x3f   :  { %2247 = vmatprep.mubr.bf16.mxu0 %v2390_v12  ;;  %2263 = vmatprep.mubr.bf16.mxu1 %v2391_v13  ;;  %v2620_v12 = vld [vmem:[#allocation5 + $0x24] ss:$8 sps:$4 sm:$0xff]   ;;  %v2624_v13 = vld [vmem:[#allocation5 + $0x20] ss:$8 sps:$4 sm:$0xff]  }
  0x46   :  { %2248 = vmatmul.mubr.bf16.gmra.mxu0 %v2392_v14  ;;  %2264 = vmatmul.mubr.bf16.gmra.mxu1 %v2393_v15  ;;  %v2626_v14 = vld [vmem:[#allocation5 + $0x34] ss:$8 sps:$4 sm:$0xff]   ;;  %v2630_v15 = vld [vmem:[#allocation5 + $0x30] ss:$8 sps:$4 sm:$0xff]  }
  0x47   :  { %2251 = vmatprep.mubr.bf16.mxu0 %v2394_v16  ;;  %2267 = vmatprep.mubr.bf16.mxu1 %v2395_v17  ;;  %v2632_v16 = vld [vmem:[#allocation5 + $0x44] ss:$8 sps:$4 sm:$0xff]   ;;  %v2636_v17 = vld [vmem:[#allocation5 + $0x40] ss:$8 sps:$4 sm:$0xff]  }
  0x4e   :  { %2252 = vmatmul.mubr.bf16.gmra.mxu0 %v2396_v18  ;;  %2268 = vmatmul.mubr.bf16.gmra.mxu1 %v2397_v19  ;;  %v2638_v18 = vld [vmem:[#allocation5 + $0x54] ss:$8 sps:$4 sm:$0xff]   ;;  %v2642_v19 = vld [vmem:[#allocation5 + $0x50] ss:$8 sps:$4 sm:$0xff]  }
  0x4f   :  { %2255 = vmatprep.mubr.bf16.mxu0 %v2398_v20  ;;  %2271 = vmatprep.mubr.bf16.mxu1 %v2399_v21  ;;  %v2644_v20 = vld [vmem:[#allocation5 + $0x64] ss:$8 sps:$4 sm:$0xff]   ;;  %v2648_v21 = vld [vmem:[#allocation5 + $0x60] ss:$8 sps:$4 sm:$0xff]  }
  0x56   :  { %2256 = vmatmul.mubr.bf16.gmra.mxu0 %v2400_v22  ;;  %2272 = vmatmul.mubr.bf16.gmra.mxu1 %v2401_v23  ;;  %v2650_v22 = vld [vmem:[#allocation5 + $0x74] ss:$8 sps:$4 sm:$0xff]   ;;  %v2654_v23 = vld [vmem:[#allocation5 + $0x70] ss:$8 sps:$4 sm:$0xff]  }
  0x57   :  { %660 = vmatprep.mubr.bf16.mxu1 %v2609_v24 }
  0xfe   :  { %v2245_v25 = vpop.f32.mrf.mxu0  ;;  %v2261_v26 = vpop.f32.mrf.mxu1 }
 0x100   :  { %v286_v27 = vpop.f32.mrf.mxu0  ;;  %v350_v28 = vpop.f32.mrf.mxu1 }
 0x102   :  { %v2246_v29 = vpop.f32.mrf.mxu0  ;;  %v2262_v30 = vpop.f32.mrf.mxu1 }
 0x103   :  { %v454_v5 = vpack.c.bf16 %v2262_v30, %v2261_v26  ;;  %v446_v6 = vpack.c.bf16 %v2246_v29, %v2245_v25  ;;  %v2656_v25 = vld [vmem:[#allocation5 + $0x84] ss:$8 sps:$4 sm:$0xff]   ;;  %v2660_v26 = vld [vmem:[#allocation5 + $0x80] ss:$8 sps:$4 sm:$0xff]   ;;  %v2450_v30 = vld [vmem:[%s2923_s4 + $0x18] sm:$0xff]  }
 0x104   :  { %v289_v31 = vpop.f32.mrf.mxu0  ;;  %v353_v32 = vpop.f32.mrf.mxu1  ;;  %v2668_v29 = vld [vmem:[#allocation5 + $0xa4] ss:$8 sps:$4 sm:$0xff]   ;;  %2275 = vmatprep.subr.bf16.mxu0 %v2450_v30 }
 0x105   :  { %v453_v7 = vpack.c.bf16 %v353_v32, %v350_v28  ;;  %v445_v8 = vpack.c.bf16 %v289_v31, %v286_v27  ;;  %v2662_v27 = vld [vmem:[#allocation5 + $0x94] ss:$8 sps:$4 sm:$0xff]   ;;  %v2666_v28 = vld [vmem:[#allocation5 + $0x90] ss:$8 sps:$4 sm:$0xff]   ;;  %2276 = vmatpush3.bf16.msra.mxu0 %v2450_v30  ;;  %v2678_v32 = vld [vmem:[#allocation5 + $0xa0] ss:$8 sps:$4 sm:$0xff]  }
 0x106   :  { %v2249_v33 = vpop.f32.mrf.mxu0  ;;  %v2265_v34 = vpop.f32.mrf.mxu1  ;;  %v2451_v31 = vld [vmem:[%s2923_s4 + $0x10] sm:$0xff]  }
 0x107   :  { %2277 = vmatprep.subr.bf16.mxu0 %v2451_v31 }
 0x108   :  { %v302_v35 = vpop.f32.mrf.mxu0  ;;  %v366_v36 = vpop.f32.mrf.mxu1 }
 0x109   :  { %2278 = vmatpush3.bf16.msra.mxu0 %v2451_v31 }
 0x10a   :  { %v2250_v37 = vpop.f32.mrf.mxu0  ;;  %v2266_v38 = vpop.f32.mrf.mxu1 }
 0x10b   :  { %v456_v1 = vpack.c.bf16 %v2266_v38, %v2265_v34  ;;  %v448_v2 = vpack.c.bf16 %v2250_v37, %v2249_v33  ;;  %v2680_v33 = vld [vmem:[#allocation5 + $0xb4] ss:$8 sps:$4 sm:$0xff]   ;;  %v2452_v34 = vld [vmem:[%s2923_s4 + $0x8] sm:$0xff]  }
 0x10c   :  { %v305_v39 = vpop.f32.mrf.mxu0  ;;  %v369_v40 = vpop.f32.mrf.mxu1  ;;  %2279 = vmatprep.subr.bf16.mxu0 %v2452_v34  ;;  %v2692_v37 = vld [vmem:[#allocation5 + $0xc4] ss:$8 sps:$4 sm:$0xff]   ;;  %v2696_v38 = vld [vmem:[#allocation5 + $0xc0] ss:$8 sps:$4 sm:$0xff]  }
 0x10d   :  { %v455_v3 = vpack.c.bf16 %v369_v40, %v366_v36  ;;  %v447_v4 = vpack.c.bf16 %v305_v39, %v302_v35  ;;  %2280 = vmatpush3.bf16.msra.mxu0 %v2452_v34  ;;  %v2453_v35 = vld [vmem:[%s2923_s4] sm:$0xff]   ;;  %v2690_v36 = vld [vmem:[#allocation5 + $0xb0] ss:$8 sps:$4 sm:$0xff]   ;;  %v2698_v39 = vld [vmem:[#allocation5 + $0xd4] ss:$8 sps:$4 sm:$0xff]  }
 0x10e   :  { %v2253_v41 = vpop.f32.mrf.mxu0  ;;  %v2269_v42 = vpop.f32.mrf.mxu1  ;;  %2281 = vmatprep.subr.bf16.mxu0 %v2453_v35  ;;  %v2702_v40 = vld [vmem:[#allocation5 + $0xd0] ss:$8 sps:$4 sm:$0xff]  }
 0x10f   :  { %2933 = vst [vmem:[#allocation11_spill] sm:$0xff] %v2702_v40 }
 0x110   :  { %v318_v43 = vpop.f32.mrf.mxu0  ;;  %v382_v44 = vpop.f32.mrf.mxu1 }
 0x111   :  { %2282 = vmatpush3.bf16.msra.mxu0 %v2453_v35 }
 0x112   :  { %v2254_v45 = vpop.f32.mrf.mxu0  ;;  %v2270_v46 = vpop.f32.mrf.mxu1 }
 0x113   :  { %v458_v61 = vpack.c.bf16 %v2270_v46, %v2269_v42  ;;  %v450_v62 = vpack.c.bf16 %v2254_v45, %v2253_v41  ;;  %v2704_v41 = vld [vmem:[#allocation5 + $0xe4] ss:$8 sps:$4 sm:$0xff]   ;;  %v2708_v42 = vld [vmem:[#allocation5 + $0xe0] ss:$8 sps:$4 sm:$0xff]  }
 0x114   :  { %v321_v47 = vpop.f32.mrf.mxu0  ;;  %v385_v48 = vpop.f32.mrf.mxu1  ;;  %2934 = vst [vmem:[#allocation12_spill] sm:$0xff] %v2704_v41  ;;  %2935 = vst [vmem:[#allocation13_spill] sm:$0xff] %v2708_v42 }
 0x115   :  { %v457_v63 = vpack.c.bf16 %v385_v48, %v382_v44  ;;  %v449_v0 = vpack.c.bf16 %v321_v47, %v318_v43  ;;  %v2710_v43 = vld [vmem:[#allocation5 + $0xf4] ss:$8 sps:$4 sm:$0xff]   ;;  %v2714_v44 = vld [vmem:[#allocation5 + $0xf0] ss:$8 sps:$4 sm:$0xff]   ;;  %v2720_v48 = vld [vmem:[%s2922_s3] ss:$0 sm:$0xff] }
 0x116   :  { %v2257_v49 = vpop.f32.mrf.mxu0  ;;  %v2273_v50 = vpop.f32.mrf.mxu1  ;;  %2936 = vst [vmem:[#allocation14_spill] sm:$0xff] %v2710_v43  ;;  %2937 = vst [vmem:[#allocation15_spill] sm:$0xff] %v2714_v44 }
 0x118   :  { %v334_v51 = vpop.f32.mrf.mxu0  ;;  %v398_v52 = vpop.f32.mrf.mxu1 }
 0x11a   :  { %v2258_v53 = vpop.f32.mrf.mxu0  ;;  %v2274_v54 = vpop.f32.mrf.mxu1 }
 0x11b   :  { %v452_v55 = vpack.c.bf16 %v2258_v53, %v2257_v49  ;;  %v460_v56 = vpack.c.bf16 %v2274_v54, %v2273_v50 }
 0x11c   :  { %v401_v57 = vpop.f32.mrf.mxu1  ;;  %v337_v58 = vpop.f32.mrf.mxu0 }
 0x11d   :  { %v459_v59 = vpack.c.bf16 %v401_v57, %v398_v52  ;;  %1963 = vmatprep.subr.bf16.mxu1 %v460_v56  ;;  %v451_v60 = vpack.c.bf16 %v337_v58, %v334_v51 }
 0x11e   :  { %1964 = vmatpush3.bf16.msra.mxu1 %v452_v55 }
 0x11f   :  { %1965 = vmatprep.subr.bf16.mxu1 %v459_v59 }
 0x122   :  { %1966 = vmatpush3.bf16.msra.mxu1 %v451_v60 }
 0x123   :  { %1967 = vmatprep.subr.bf16.mxu1 %v458_v61 }
 0x126   :  { %1968 = vmatpush3.bf16.msra.mxu1 %v450_v62 }
 0x127   :  { %1969 = vmatprep.subr.bf16.mxu1 %v457_v63 }
 0x12a   :  { %1970 = vmatpush3.bf16.msra.mxu1 %v449_v0 }
 0x12b   :  { %1971 = vmatprep.subr.bf16.mxu1 %v456_v1 }
 0x12e   :  { %1972 = vmatpush3.bf16.msra.mxu1 %v448_v2 }
 0x12f   :  { %1973 = vmatprep.subr.bf16.mxu1 %v455_v3 }
 0x132   :  { %1974 = vmatpush3.bf16.msra.mxu1 %v447_v4 }
 0x133   :  { %1975 = vmatprep.subr.bf16.mxu1 %v454_v5 }
 0x136   :  { %1976 = vmatpush3.bf16.msra.mxu1 %v446_v6 }
 0x137   :  { %1977 = vmatprep.subr.bf16.mxu1 %v453_v7 }
 0x13a   :  { %1978 = vmatpush3.bf16.msra.mxu1 %v445_v8 }
 0x13d   :  { %661 = vmatmul.mubr.bf16.vlgmr.msra.gmra.mxu1 %v2612_v9 }
 0x13e   :  { %668 = vmatprep.mubr.bf16.mxu1 %v2614_v10 }
 0x145   :  { %669 = vmatmul.mubr.bf16.gmra.mxu1 %v2618_v11 }
 0x146   :  { %676 = vmatprep.mubr.bf16.mxu1 %v2620_v12 }
 0x14d   :  { %677 = vmatmul.mubr.bf16.gmra.mxu1 %v2624_v13 }
 0x14e   :  { %684 = vmatprep.mubr.bf16.mxu1 %v2626_v14 }
 0x155   :  { %685 = vmatmul.mubr.bf16.gmra.mxu1 %v2630_v15 }
 0x156   :  { %692 = vmatprep.mubr.bf16.mxu1 %v2632_v16 }
 0x15d   :  { %693 = vmatmul.mubr.bf16.gmra.mxu1 %v2636_v17 }
 0x15e   :  { %700 = vmatprep.mubr.bf16.mxu1 %v2638_v18 }
 0x165   :  { %701 = vmatmul.mubr.bf16.gmra.mxu1 %v2642_v19 }
 0x166   :  { %708 = vmatprep.mubr.bf16.mxu1 %v2644_v20 }
 0x16d   :  { %709 = vmatmul.mubr.bf16.gmra.mxu1 %v2648_v21 }
 0x16e   :  { %716 = vmatprep.mubr.bf16.mxu1 %v2650_v22 }
 0x175   :  { %717 = vmatmul.mubr.bf16.gmra.mxu1 %v2654_v23 }
 0x176   :  { %724 = vmatprep.mubr.bf16.mxu1 %v2656_v25 }
 0x17d   :  { %725 = vmatmul.mubr.bf16.gmra.mxu1 %v2660_v26 }
 0x17e   :  { %732 = vmatprep.mubr.bf16.mxu1 %v2662_v27 }
 0x185   :  { %733 = vmatmul.mubr.bf16.gmra.mxu1 %v2666_v28 }
 0x186   :  { %740 = vmatprep.mubr.bf16.mxu1 %v2668_v29 }
 0x18d   :  { %741 = vmatmul.mubr.bf16.gmra.mxu1 %v2678_v32 }
 0x18e   :  { %748 = vmatprep.mubr.bf16.mxu1 %v2680_v33 }
 0x195   :  { %749 = vmatmul.mubr.bf16.gmra.mxu1 %v2690_v36 }
 0x196   :  { %756 = vmatprep.mubr.bf16.mxu1 %v2692_v37 }
 0x19d   :  { %757 = vmatmul.mubr.bf16.gmra.mxu1 %v2696_v38 }
 0x19e   :  { %764 = vmatprep.mubr.bf16.mxu1 %v2698_v39 }
 0x1a5   :  { %765 = vmatmul.mubr.bf16.gmra.mxu1 %v2702_v40 }
 0x1a6   :  { %772 = vmatprep.mubr.bf16.mxu1 %v2704_v41 }
 0x1ad   :  { %773 = vmatmul.mubr.bf16.gmra.mxu1 %v2708_v42 }
 0x1ae   :  { %780 = vmatprep.mubr.bf16.mxu1 %v2710_v43 }
 0x1b5   :  { %781 = vmatmul.mubr.bf16.gmra.mxu1 %v2714_v44 }
 0x1fd   :  { %v1979_v45 = vpop.f32.mrf.mxu1 }
 0x1ff   :  { %v1980_v46 = vpop.f32.mrf.mxu1 }
 0x200   :  { %v1981_v47 = vadd.f32 %v1980_v46, %v1979_v45 }
 0x201   :  { %v1982_v49 = vpop.f32.mrf.mxu1 }
 0x202   :  { %v663_v51 = vadd.f32 %v1981_v47, %v2720_v48 }
 0x203   :  { %v1983_v50 = vpop.f32.mrf.mxu1 }
 0x204   :  { %v1984_v52 = vadd.f32 %v1983_v50, %v1982_v49  ;;  %v789_v56 = vmax.f32 %v663_v51, 0.0 }
 0x205   :  { %v1985_v53 = vpop.f32.mrf.mxu1 }
 0x206   :  { %v666_v54 = vadd.f32 %v1984_v52, %v2720_v48 }
 0x207   :  { %v1986_v55 = vpop.f32.mrf.mxu1 }
 0x208   :  { %v790_v57 = vmax.f32 %v666_v54, 0.0  ;;  %v1987_v58 = vadd.f32 %v1986_v55, %v1985_v53 }
 0x209   :  { %v1988_v59 = vpop.f32.mrf.mxu1 }
 0x20a   :  { %v821_v60 = vpack.c.bf16 %v790_v57, %v789_v56  ;;  %v671_v62 = vadd.f32 %v1987_v58, %v2720_v48 }
 0x20b   :  { %v1989_v61 = vpop.f32.mrf.mxu1 }
 0x20c   :  { %v1990_v63 = vadd.f32 %v1989_v61, %v1988_v59  ;;  %2283 = vmatprep.mubr.msk.bf16.mxu0 %vm869_vm0, %v821_v60  ;;  %v791_v3 = vmax.f32 %v671_v62, 0.0 }
 0x20d   :  { %v1991_v0 = vpop.f32.mrf.mxu1 }
 0x20e   :  { %v674_v1 = vadd.f32 %v1990_v63, %v2720_v48 }
 0x20f   :  { %v1992_v2 = vpop.f32.mrf.mxu1 }
 0x210   :  { %v792_v4 = vmax.f32 %v674_v1, 0.0  ;;  %v1993_v5 = vadd.f32 %v1992_v2, %v1991_v0 }
 0x211   :  { %v1994_v6 = vpop.f32.mrf.mxu1 }
 0x212   :  { %v822_v7 = vpack.c.bf16 %v792_v4, %v791_v3  ;;  %v679_v30 = vadd.f32 %v1993_v5, %v2720_v48 }
 0x213   :  { %v1995_v8 = vpop.f32.mrf.mxu1 }
 0x214   :  { %v1996_v31 = vadd.f32 %v1995_v8, %v1994_v6  ;;  %2284 = vmatmul.mubr.msk.bf16.vlgmr.msra.gmra.mxu0 %vm869_vm0, %v822_v7  ;;  %v793_v46 = vmax.f32 %v679_v30, 0.0 }
 0x215   :  { %v1997_v34 = vpop.f32.mrf.mxu1 }
 0x216   :  { %v682_v35 = vadd.f32 %v1996_v31, %v2720_v48 }
 0x217   :  { %v1998_v45 = vpop.f32.mrf.mxu1 }
 0x218   :  { %v794_v47 = vmax.f32 %v682_v35, 0.0  ;;  %v1999_v49 = vadd.f32 %v1998_v45, %v1997_v34 }
 0x219   :  { %v2000_v50 = vpop.f32.mrf.mxu1 }
 0x21a   :  { %v823_v51 = vpack.c.bf16 %v794_v47, %v793_v46  ;;  %v687_v53 = vadd.f32 %v1999_v49, %v2720_v48 }
 0x21b   :  { %v2001_v52 = vpop.f32.mrf.mxu1 }
 0x21c   :  { %v2002_v54 = vadd.f32 %v2001_v52, %v2000_v50  ;;  %2287 = vmatprep.mubr.msk.bf16.mxu0 %vm869_vm0, %v823_v51  ;;  %v795_v58 = vmax.f32 %v687_v53, 0.0 }
 0x21d   :  { %v2003_v55 = vpop.f32.mrf.mxu1 }
 0x21e   :  { %v690_v56 = vadd.f32 %v2002_v54, %v2720_v48 }
 0x21f   :  { %v2004_v57 = vpop.f32.mrf.mxu1 }
 0x220   :  { %v796_v59 = vmax.f32 %v690_v56, 0.0  ;;  %v2005_v60 = vadd.f32 %v2004_v57, %v2003_v55 }
 0x221   :  { %v2006_v61 = vpop.f32.mrf.mxu1 }
 0x222   :  { %v824_v62 = vpack.c.bf16 %v796_v59, %v795_v58  ;;  %v695_v0 = vadd.f32 %v2005_v60, %v2720_v48 }
 0x223   :  { %v2007_v63 = vpop.f32.mrf.mxu1 }
 0x224   :  { %v2008_v1 = vadd.f32 %v2007_v63, %v2006_v61  ;;  %2288 = vmatmul.mubr.msk.bf16.gmra.mxu0 %vm869_vm0, %v824_v62  ;;  %v797_v5 = vmax.f32 %v695_v0, 0.0 }
 0x225   :  { %v2009_v2 = vpop.f32.mrf.mxu1 }
 0x226   :  { %v698_v3 = vadd.f32 %v2008_v1, %v2720_v48 }
 0x227   :  { %v2010_v4 = vpop.f32.mrf.mxu1 }
 0x228   :  { %v798_v6 = vmax.f32 %v698_v3, 0.0  ;;  %v2011_v7 = vadd.f32 %v2010_v4, %v2009_v2 }
 0x229   :  { %v2012_v8 = vpop.f32.mrf.mxu1 }
 0x22a   :  { %v825_v30 = vpack.c.bf16 %v798_v6, %v797_v5  ;;  %v703_v34 = vadd.f32 %v2011_v7, %v2720_v48 }
 0x22b   :  { %v2013_v31 = vpop.f32.mrf.mxu1 }
 0x22c   :  { %v2014_v35 = vadd.f32 %v2013_v31, %v2012_v8  ;;  %2291 = vmatprep.mubr.msk.bf16.mxu0 %vm869_vm0, %v825_v30  ;;  %v799_v49 = vmax.f32 %v703_v34, 0.0 }
 0x22d   :  { %v2015_v45 = vpop.f32.mrf.mxu1 }
 0x22e   :  { %v706_v46 = vadd.f32 %v2014_v35, %v2720_v48 }
 0x22f   :  { %v2016_v47 = vpop.f32.mrf.mxu1 }
 0x230   :  { %v800_v50 = vmax.f32 %v706_v46, 0.0  ;;  %v2017_v51 = vadd.f32 %v2016_v47, %v2015_v45 }
 0x231   :  { %v2018_v52 = vpop.f32.mrf.mxu1 }
 0x232   :  { %v826_v53 = vpack.c.bf16 %v800_v50, %v799_v49  ;;  %v711_v55 = vadd.f32 %v2017_v51, %v2720_v48 }
 0x233   :  { %v2019_v54 = vpop.f32.mrf.mxu1 }
 0x234   :  { %v2020_v56 = vadd.f32 %v2019_v54, %v2018_v52  ;;  %2292 = vmatmul.mubr.msk.bf16.gmra.mxu0 %vm869_vm0, %v826_v53  ;;  %v801_v60 = vmax.f32 %v711_v55, 0.0 }
 0x235   :  { %v2021_v57 = vpop.f32.mrf.mxu1 }
 0x236   :  { %v714_v58 = vadd.f32 %v2020_v56, %v2720_v48 }
 0x237   :  { %v2022_v59 = vpop.f32.mrf.mxu1 }
 0x238   :  { %v802_v61 = vmax.f32 %v714_v58, 0.0  ;;  %v2023_v62 = vadd.f32 %v2022_v59, %v2021_v57 }
 0x239   :  { %v2024_v63 = vpop.f32.mrf.mxu1 }
 0x23a   :  { %v827_v0 = vpack.c.bf16 %v802_v61, %v801_v60  ;;  %v719_v2 = vadd.f32 %v2023_v62, %v2720_v48 }
 0x23b   :  { %v2025_v1 = vpop.f32.mrf.mxu1 }
 0x23c   :  { %v2026_v3 = vadd.f32 %v2025_v1, %v2024_v63  ;;  %2295 = vmatprep.mubr.msk.bf16.mxu0 %vm869_vm0, %v827_v0  ;;  %v803_v7 = vmax.f32 %v719_v2, 0.0 }
 0x23d   :  { %v2027_v4 = vpop.f32.mrf.mxu1 }
 0x23e   :  { %v722_v5 = vadd.f32 %v2026_v3, %v2720_v48 }
 0x23f   :  { %v2028_v6 = vpop.f32.mrf.mxu1 }
 0x240   :  { %v804_v8 = vmax.f32 %v722_v5, 0.0  ;;  %v2029_v30 = vadd.f32 %v2028_v6, %v2027_v4 }
 0x241   :  { %v2030_v31 = vpop.f32.mrf.mxu1 }
 0x242   :  { %v828_v34 = vpack.c.bf16 %v804_v8, %v803_v7  ;;  %v727_v45 = vadd.f32 %v2029_v30, %v2720_v48 }
 0x243   :  { %v2031_v35 = vpop.f32.mrf.mxu1 }
 0x244   :  { %v2032_v46 = vadd.f32 %v2031_v35, %v2030_v31  ;;  %2296 = vmatmul.mubr.msk.bf16.gmra.mxu0 %vm869_vm0, %v828_v34  ;;  %v805_v51 = vmax.f32 %v727_v45, 0.0 }
 0x245   :  { %v2033_v47 = vpop.f32.mrf.mxu1 }
 0x246   :  { %v730_v49 = vadd.f32 %v2032_v46, %v2720_v48 }
 0x247   :  { %v2034_v50 = vpop.f32.mrf.mxu1 }
 0x248   :  { %v806_v52 = vmax.f32 %v730_v49, 0.0  ;;  %v2035_v53 = vadd.f32 %v2034_v50, %v2033_v47 }
 0x249   :  { %v2036_v54 = vpop.f32.mrf.mxu1 }
 0x24a   :  { %v829_v55 = vpack.c.bf16 %v806_v52, %v805_v51  ;;  %v735_v57 = vadd.f32 %v2035_v53, %v2720_v48 }
 0x24b   :  { %v2037_v56 = vpop.f32.mrf.mxu1 }
 0x24c   :  { %v2038_v58 = vadd.f32 %v2037_v56, %v2036_v54  ;;  %2299 = vmatprep.mubr.msk.bf16.mxu0 %vm869_vm0, %v829_v55  ;;  %v807_v62 = vmax.f32 %v735_v57, 0.0 }
 0x24d   :  { %v2039_v59 = vpop.f32.mrf.mxu1 }
 0x24e   :  { %v738_v60 = vadd.f32 %v2038_v58, %v2720_v48 }
 0x24f   :  { %v2040_v61 = vpop.f32.mrf.mxu1 }
 0x250   :  { %v808_v63 = vmax.f32 %v738_v60, 0.0  ;;  %v2041_v0 = vadd.f32 %v2040_v61, %v2039_v59 }
 0x251   :  { %v2042_v1 = vpop.f32.mrf.mxu1 }
 0x252   :  { %v830_v2 = vpack.c.bf16 %v808_v63, %v807_v62  ;;  %v743_v4 = vadd.f32 %v2041_v0, %v2720_v48 }
 0x253   :  { %v2043_v3 = vpop.f32.mrf.mxu1 }
 0x254   :  { %v2044_v5 = vadd.f32 %v2043_v3, %v2042_v1  ;;  %2300 = vmatmul.mubr.msk.bf16.gmra.mxu0 %vm869_vm0, %v830_v2  ;;  %v809_v30 = vmax.f32 %v743_v4, 0.0 }
 0x255   :  { %v2045_v6 = vpop.f32.mrf.mxu1 }
 0x256   :  { %v746_v7 = vadd.f32 %v2044_v5, %v2720_v48 }
 0x257   :  { %v2046_v8 = vpop.f32.mrf.mxu1 }
 0x258   :  { %v810_v31 = vmax.f32 %v746_v7, 0.0  ;;  %v2047_v34 = vadd.f32 %v2046_v8, %v2045_v6 }
 0x259   :  { %v2048_v35 = vpop.f32.mrf.mxu1 }
 0x25a   :  { %v831_v45 = vpack.c.bf16 %v810_v31, %v809_v30  ;;  %v751_v47 = vadd.f32 %v2047_v34, %v2720_v48 }
 0x25b   :  { %v2049_v46 = vpop.f32.mrf.mxu1 }
 0x25c   :  { %v2050_v49 = vadd.f32 %v2049_v46, %v2048_v35  ;;  %2303 = vmatprep.mubr.msk.bf16.mxu0 %vm869_vm0, %v831_v45  ;;  %v811_v53 = vmax.f32 %v751_v47, 0.0 }
 0x25d   :  { %v2051_v50 = vpop.f32.mrf.mxu1 }
 0x25e   :  { %v754_v51 = vadd.f32 %v2050_v49, %v2720_v48 }
 0x25f   :  { %v2052_v52 = vpop.f32.mrf.mxu1 }
 0x260   :  { %v812_v54 = vmax.f32 %v754_v51, 0.0  ;;  %v2053_v55 = vadd.f32 %v2052_v52, %v2051_v50 }
 0x261   :  { %v2054_v56 = vpop.f32.mrf.mxu1 }
 0x262   :  { %v832_v57 = vpack.c.bf16 %v812_v54, %v811_v53  ;;  %v759_v59 = vadd.f32 %v2053_v55, %v2720_v48 }
 0x263   :  { %v2055_v58 = vpop.f32.mrf.mxu1 }
 0x264   :  { %v2056_v60 = vadd.f32 %v2055_v58, %v2054_v56  ;;  %2304 = vmatmul.mubr.msk.bf16.gmra.mxu0 %vm869_vm0, %v832_v57  ;;  %v813_v0 = vmax.f32 %v759_v59, 0.0 }
 0x265   :  { %v2057_v61 = vpop.f32.mrf.mxu1 }
 0x266   :  { %v762_v62 = vadd.f32 %v2056_v60, %v2720_v48 }
 0x267   :  { %v2058_v63 = vpop.f32.mrf.mxu1 }
 0x268   :  { %v814_v1 = vmax.f32 %v762_v62, 0.0  ;;  %v2059_v2 = vadd.f32 %v2058_v63, %v2057_v61 }
 0x269   :  { %v2060_v3 = vpop.f32.mrf.mxu1 }
 0x26a   :  { %v833_v4 = vpack.c.bf16 %v814_v1, %v813_v0  ;;  %v767_v6 = vadd.f32 %v2059_v2, %v2720_v48 }
 0x26b   :  { %v2061_v5 = vpop.f32.mrf.mxu1 }
 0x26c   :  { %v2062_v7 = vadd.f32 %v2061_v5, %v2060_v3  ;;  %2307 = vmatprep.mubr.msk.bf16.mxu0 %vm869_vm0, %v833_v4  ;;  %v815_v34 = vmax.f32 %v767_v6, 0.0 }
 0x26d   :  { %v2063_v8 = vpop.f32.mrf.mxu1 }
 0x26e   :  { %v770_v30 = vadd.f32 %v2062_v7, %v2720_v48 }
 0x26f   :  { %v2064_v31 = vpop.f32.mrf.mxu1 }
 0x270   :  { %v816_v35 = vmax.f32 %v770_v30, 0.0  ;;  %v2065_v45 = vadd.f32 %v2064_v31, %v2063_v8 }
 0x271   :  { %v2066_v46 = vpop.f32.mrf.mxu1 }
 0x272   :  { %v834_v47 = vpack.c.bf16 %v816_v35, %v815_v34  ;;  %v775_v50 = vadd.f32 %v2065_v45, %v2720_v48 }
 0x273   :  { %v2067_v49 = vpop.f32.mrf.mxu1 }
 0x274   :  { %v2068_v51 = vadd.f32 %v2067_v49, %v2066_v46  ;;  %2308 = vmatmul.mubr.msk.bf16.gmra.mxu0 %vm869_vm0, %v834_v47  ;;  %v817_v55 = vmax.f32 %v775_v50, 0.0 }
 0x275   :  { %v2069_v52 = vpop.f32.mrf.mxu1 }
 0x276   :  { %v778_v53 = vadd.f32 %v2068_v51, %v2720_v48 }
 0x277   :  { %v2070_v54 = vpop.f32.mrf.mxu1 }
 0x278   :  { %v818_v56 = vmax.f32 %v778_v53, 0.0  ;;  %v2071_v57 = vadd.f32 %v2070_v54, %v2069_v52 }
 0x279   :  { %v2072_v58 = vpop.f32.mrf.mxu1 }
 0x27a   :  { %v835_v59 = vpack.c.bf16 %v818_v56, %v817_v55  ;;  %v783_v61 = vadd.f32 %v2071_v57, %v2720_v48 }
 0x27b   :  { %v2073_v60 = vpop.f32.mrf.mxu1 }
 0x27c   :  { %v2074_v62 = vadd.f32 %v2073_v60, %v2072_v58  ;;  %2311 = vmatprep.mubr.msk.bf16.mxu0 %vm869_vm0, %v835_v59  ;;  %v819_v0 = vmax.f32 %v783_v61, 0.0 }
 0x27e   :  { %v786_v63 = vadd.f32 %v2074_v62, %v2720_v48 }
 0x280   :  { %v820_v1 = vmax.f32 %v786_v63, 0.0 }
 0x282   :  { %v836_v2 = vpack.c.bf16 %v820_v1, %v819_v0 }
 0x284   :  { %2312 = vmatmul.mubr.msk.bf16.gmra.mxu0 %vm869_vm0, %v836_v2 }
 0x285   :  { %1331 = vmatprep.mubr.bf16.mxu0 %v2609_v24 }
 0x2d4   :  { %v2771_v3 = vpop.f32.mrf.mxu0 }
 0x2d6   :  { %v2773_v4 = vpop.f32.mrf.mxu0 }
 0x2d8   :  { %v2286_v5 = vpop.f32.mrf.mxu0 }
 0x2d9   :  { %v1117_v6 = vpack.c.bf16 %v2286_v5, %v2771_v3 }
 0x2da   :  { %v2776_v7 = vpop.f32.mrf.mxu0 }
 0x2db   :  { %v1116_v8 = vpack.c.bf16 %v2776_v7, %v2773_v4 }
 0x2e4   :  { %v2289_v48 = vpop.f32.mrf.mxu0 }
 0x2e6   :  { %v968_v30 = vpop.f32.mrf.mxu0 }
 0x2e8   :  { %v2290_v31 = vpop.f32.mrf.mxu0 }
 0x2e9   :  { %v1119_v34 = vpack.c.bf16 %v2290_v31, %v2289_v48 }
 0x2ea   :  { %v971_v35 = vpop.f32.mrf.mxu0 }
 0x2eb   :  { %v1118_v45 = vpack.c.bf16 %v971_v35, %v968_v30 }
 0x2f4   :  { %v2293_v46 = vpop.f32.mrf.mxu0 }
 0x2f6   :  { %v984_v24 = vpop.f32.mrf.mxu0 }
 0x2f8   :  { %v2294_v47 = vpop.f32.mrf.mxu0 }
 0x2f9   :  { %v1121_v44 = vpack.c.bf16 %v2294_v47, %v2293_v46 }
 0x2fa   :  { %v987_v49 = vpop.f32.mrf.mxu0 }
 0x2fb   :  { %v1120_v42 = vpack.c.bf16 %v987_v49, %v984_v24 }
 0x304   :  { %v2297_v50 = vpop.f32.mrf.mxu0 }
 0x306   :  { %v1000_v51 = vpop.f32.mrf.mxu0 }
 0x308   :  { %v2298_v52 = vpop.f32.mrf.mxu0 }
 0x309   :  { %v1123_v7 = vpack.c.bf16 %v2298_v52, %v2297_v50 }
 0x30a   :  { %v1003_v53 = vpop.f32.mrf.mxu0 }
 0x30b   :  { %v1122_v31 = vpack.c.bf16 %v1003_v53, %v1000_v51  ;;  %v2454_v51 = vld [vmem:[%s2925_s6 + $0x18] sm:$0xff]  }
 0x30c   :  { %2315 = vmatprep.subr.bf16.mxu1 %v2454_v51 }
 0x30d   :  { %2316 = vmatpush3.bf16.msra.mxu1 %v2454_v51 }
 0x314   :  { %v2301_v54 = vpop.f32.mrf.mxu0 }
 0x316   :  { %v1016_v55 = vpop.f32.mrf.mxu0 }
 0x318   :  { %v2302_v56 = vpop.f32.mrf.mxu0 }
 0x319   :  { %v1125_v50 = vpack.c.bf16 %v2302_v56, %v2301_v54 }
 0x31a   :  { %v1019_v57 = vpop.f32.mrf.mxu0 }
 0x31b   :  { %v1124_v52 = vpack.c.bf16 %v1019_v57, %v1016_v55 }
 0x324   :  { %v2305_v58 = vpop.f32.mrf.mxu0 }
 0x326   :  { %v1032_v59 = vpop.f32.mrf.mxu0 }
 0x328   :  { %v2306_v60 = vpop.f32.mrf.mxu0 }
 0x329   :  { %v1127_v41 = vpack.c.bf16 %v2306_v60, %v2305_v58 }
 0x32a   :  { %v1035_v61 = vpop.f32.mrf.mxu0 }
 0x32b   :  { %v1126_v40 = vpack.c.bf16 %v1035_v61, %v1032_v59 }
 0x334   :  { %v2309_v62 = vpop.f32.mrf.mxu0 }
 0x336   :  { %v1048_v63 = vpop.f32.mrf.mxu0 }
 0x338   :  { %v2310_v0 = vpop.f32.mrf.mxu0 }
 0x339   :  { %v1129_v35 = vpack.c.bf16 %v2310_v0, %v2309_v62 }
 0x33a   :  { %v1051_v1 = vpop.f32.mrf.mxu0 }
 0x33b   :  { %v1128_v43 = vpack.c.bf16 %v1051_v1, %v1048_v63 }
 0x344   :  { %v2313_v2 = vpop.f32.mrf.mxu0 }
 0x346   :  { %v1064_v3 = vpop.f32.mrf.mxu0 }
 0x348   :  { %v2314_v4 = vpop.f32.mrf.mxu0 }
 0x349   :  { %v1131_v5 = vpack.c.bf16 %v2314_v4, %v2313_v2 }
 0x34a   :  { %v1067_v48 = vpop.f32.mrf.mxu0 }
 0x34b   :  { %v1130_v30 = vpack.c.bf16 %v1067_v48, %v1064_v3  ;;  %2095 = vmatprep.subr.bf16.mxu0 %v1131_v5 }
 0x34c   :  { %2096 = vmatpush3.bf16.msra.mxu0 %v1123_v7 }
 0x34d   :  { %2097 = vmatprep.subr.bf16.mxu0 %v1130_v30 }
 0x350   :  { %2098 = vmatpush3.bf16.msra.mxu0 %v1122_v31 }
 0x351   :  { %2099 = vmatprep.subr.bf16.mxu0 %v1129_v35 }
 0x354   :  { %2100 = vmatpush3.bf16.msra.mxu0 %v1121_v44  ;;  %v2455_v44 = vld [vmem:[%s2925_s6 + $0x10] sm:$0xff]  }
 0x355   :  { %2101 = vmatprep.subr.bf16.mxu0 %v1128_v43  ;;  %2317 = vmatprep.subr.bf16.mxu1 %v2455_v44 }
 0x356   :  { %2318 = vmatpush3.bf16.msra.mxu1 %v2455_v44 }
 0x358   :  { %2102 = vmatpush3.bf16.msra.mxu0 %v1120_v42 }
 0x359   :  { %2103 = vmatprep.subr.bf16.mxu0 %v1127_v41 }
 0x35c   :  { %2104 = vmatpush3.bf16.msra.mxu0 %v1119_v34 }
 0x35d   :  { %2105 = vmatprep.subr.bf16.mxu0 %v1126_v40 }
 0x360   :  { %2106 = vmatpush3.bf16.msra.mxu0 %v1118_v45 }
 0x361   :  { %2107 = vmatprep.subr.bf16.mxu0 %v1125_v50 }
 0x364   :  { %2108 = vmatpush3.bf16.msra.mxu0 %v1117_v6 }
 0x365   :  { %2109 = vmatprep.subr.bf16.mxu0 %v1124_v52 }
 0x368   :  { %2110 = vmatpush3.bf16.msra.mxu0 %v1116_v8 }
 0x36b   :  { %1332 = vmatmul.mubr.bf16.vlgmr.msra.gmra.mxu0 %v2612_v9  ;;  %v2456_v9 = vld [vmem:[%s2925_s6 + $0x8] sm:$0xff]  }
 0x36c   :  { %1339 = vmatprep.mubr.bf16.mxu0 %v2614_v10  ;;  %2319 = vmatprep.subr.bf16.mxu1 %v2456_v9  ;;  %v2457_v10 = vld [vmem:[%s2925_s6] sm:$0xff]  }
 0x36d   :  { %2320 = vmatpush3.bf16.msra.mxu1 %v2456_v9 }
 0x36e   :  { %2321 = vmatprep.subr.bf16.mxu1 %v2457_v10 }
 0x371   :  { %2322 = vmatpush3.bf16.msra.mxu1 %v2457_v10 }
 0x373   :  { %1340 = vmatmul.mubr.bf16.gmra.mxu0 %v2618_v11  ;;  %v2938_v11 = vld [vmem:[#allocation11_spill] sm:$0xff] }
 0x374   :  { %1347 = vmatprep.mubr.bf16.mxu0 %v2620_v12  ;;  %v2939_v12 = vld [vmem:[#allocation12_spill] sm:$0xff] }
 0x37b   :  { %1348 = vmatmul.mubr.bf16.gmra.mxu0 %v2624_v13  ;;  %v2940_v13 = vld [vmem:[#allocation13_spill] sm:$0xff] }
 0x37c   :  { %1355 = vmatprep.mubr.bf16.mxu0 %v2626_v14  ;;  %v2941_v14 = vld [vmem:[#allocation14_spill] sm:$0xff] }
 0x383   :  { %1356 = vmatmul.mubr.bf16.gmra.mxu0 %v2630_v15  ;;  %v2942_v15 = vld [vmem:[#allocation15_spill] sm:$0xff] }
 0x384   :  { %1363 = vmatprep.mubr.bf16.mxu0 %v2632_v16 }
 0x38b   :  { %1364 = vmatmul.mubr.bf16.gmra.mxu0 %v2636_v17 }
 0x38c   :  { %1371 = vmatprep.mubr.bf16.mxu0 %v2638_v18 }
 0x393   :  { %1372 = vmatmul.mubr.bf16.gmra.mxu0 %v2642_v19  ;;  %v2826_v19 = vld [vmem:[%s2924_s5] ss:$0 sm:$0xff] }
 0x394   :  { %1379 = vmatprep.mubr.bf16.mxu0 %v2644_v20 }
 0x39b   :  { %1380 = vmatmul.mubr.bf16.gmra.mxu0 %v2648_v21 }
 0x39c   :  { %1387 = vmatprep.mubr.bf16.mxu0 %v2650_v22 }
 0x3a3   :  { %1388 = vmatmul.mubr.bf16.gmra.mxu0 %v2654_v23 }
 0x3a4   :  { %1395 = vmatprep.mubr.bf16.mxu0 %v2656_v25 }
 0x3ab   :  { %1396 = vmatmul.mubr.bf16.gmra.mxu0 %v2660_v26 }
 0x3ac   :  { %1403 = vmatprep.mubr.bf16.mxu0 %v2662_v27 }
 0x3b3   :  { %1404 = vmatmul.mubr.bf16.gmra.mxu0 %v2666_v28 }
 0x3b4   :  { %1411 = vmatprep.mubr.bf16.mxu0 %v2668_v29 }
 0x3bb   :  { %1412 = vmatmul.mubr.bf16.gmra.mxu0 %v2678_v32 }
 0x3bc   :  { %1419 = vmatprep.mubr.bf16.mxu0 %v2680_v33 }
 0x3c3   :  { %1420 = vmatmul.mubr.bf16.gmra.mxu0 %v2690_v36 }
 0x3c4   :  { %1427 = vmatprep.mubr.bf16.mxu0 %v2692_v37 }
 0x3cb   :  { %1428 = vmatmul.mubr.bf16.gmra.mxu0 %v2696_v38 }
 0x3cc   :  { %1435 = vmatprep.mubr.bf16.mxu0 %v2698_v39 }
 0x3d3   :  { %1436 = vmatmul.mubr.bf16.gmra.mxu0 %v2938_v11 }
 0x3d4   :  { %1443 = vmatprep.mubr.bf16.mxu0 %v2939_v12 }
 0x3db   :  { %1444 = vmatmul.mubr.bf16.gmra.mxu0 %v2940_v13 }
 0x3dc   :  { %1451 = vmatprep.mubr.bf16.mxu0 %v2941_v14 }
 0x3e3   :  { %1452 = vmatmul.mubr.bf16.gmra.mxu0 %v2942_v15 }
 0x42b   :  { %v2111_v16 = vpop.f32.mrf.mxu0 }
 0x42d   :  { %v2112_v17 = vpop.f32.mrf.mxu0 }
 0x42e   :  { %v2113_v18 = vadd.f32 %v2112_v17, %v2111_v16 }
 0x42f   :  { %v2114_v20 = vpop.f32.mrf.mxu0 }
 0x430   :  { %v1334_v22 = vadd.f32 %v2113_v18, %v2826_v19 }
 0x431   :  { %v2115_v21 = vpop.f32.mrf.mxu0 }
 0x432   :  { %v2116_v23 = vadd.f32 %v2115_v21, %v2114_v20  ;;  %v1460_v28 = vmax.f32 %v1334_v22, 0.0 }
 0x433   :  { %v2117_v25 = vpop.f32.mrf.mxu0 }
 0x434   :  { %v1337_v26 = vadd.f32 %v2116_v23, %v2826_v19 }
 0x435   :  { %v2118_v27 = vpop.f32.mrf.mxu0 }
 0x436   :  { %v1461_v29 = vmax.f32 %v1337_v26, 0.0  ;;  %v2119_v32 = vadd.f32 %v2118_v27, %v2117_v25 }
 0x437   :  { %v2120_v33 = vpop.f32.mrf.mxu0 }
 0x438   :  { %v1492_v36 = vpack.c.bf16 %v1461_v29, %v1460_v28  ;;  %v1342_v38 = vadd.f32 %v2119_v32, %v2826_v19 }
 0x439   :  { %v2121_v37 = vpop.f32.mrf.mxu0 }
 0x43a   :  { %v2122_v39 = vadd.f32 %v2121_v37, %v2120_v33  ;;  %2323 = vmatprep.mubr.msk.bf16.mxu1 %vm869_vm0, %v1492_v36  ;;  %v1462_v43 = vmax.f32 %v1342_v38, 0.0 }
 0x43b   :  { %v2123_v40 = vpop.f32.mrf.mxu0 }
 0x43c   :  { %v1345_v41 = vadd.f32 %v2122_v39, %v2826_v19 }
 0x43d   :  { %v2124_v42 = vpop.f32.mrf.mxu0 }
 0x43e   :  { %v1463_v6 = vmax.f32 %v1345_v41, 0.0  ;;  %v2125_v8 = vadd.f32 %v2124_v42, %v2123_v40 }
 0x43f   :  { %v2126_v34 = vpop.f32.mrf.mxu0 }
 0x440   :  { %v1493_v45 = vpack.c.bf16 %v1463_v6, %v1462_v43  ;;  %v1350_v24 = vadd.f32 %v2125_v8, %v2826_v19 }
 0x441   :  { %v2127_v46 = vpop.f32.mrf.mxu0 }
 0x442   :  { %v2128_v47 = vadd.f32 %v2127_v46, %v2126_v34  ;;  %2324 = vmatmul.mubr.msk.bf16.vlgmr.msra.gmra.mxu1 %vm869_vm0, %v1493_v45  ;;  %v1464_v55 = vmax.f32 %v1350_v24, 0.0 }
 0x443   :  { %v2129_v49 = vpop.f32.mrf.mxu0 }
 0x444   :  { %v1353_v53 = vadd.f32 %v2128_v47, %v2826_v19 }
 0x445   :  { %v2130_v54 = vpop.f32.mrf.mxu0 }
 0x446   :  { %v1465_v56 = vmax.f32 %v1353_v53, 0.0  ;;  %v2131_v57 = vadd.f32 %v2130_v54, %v2129_v49 }
 0x447   :  { %v2132_v58 = vpop.f32.mrf.mxu0 }
 0x448   :  { %v1494_v59 = vpack.c.bf16 %v1465_v56, %v1464_v55  ;;  %v1358_v61 = vadd.f32 %v2131_v57, %v2826_v19 }
 0x449   :  { %v2133_v60 = vpop.f32.mrf.mxu0 }
 0x44a   :  { %v2134_v62 = vadd.f32 %v2133_v60, %v2132_v58  ;;  %2327 = vmatprep.mubr.msk.bf16.mxu1 %vm869_vm0, %v1494_v59  ;;  %v1466_v2 = vmax.f32 %v1358_v61, 0.0 }
 0x44b   :  { %v2135_v63 = vpop.f32.mrf.mxu0 }
 0x44c   :  { %v1361_v0 = vadd.f32 %v2134_v62, %v2826_v19 }
 0x44d   :  { %v2136_v1 = vpop.f32.mrf.mxu0 }
 0x44e   :  { %v1467_v3 = vmax.f32 %v1361_v0, 0.0  ;;  %v2137_v4 = vadd.f32 %v2136_v1, %v2135_v63 }
 0x44f   :  { %v2138_v5 = vpop.f32.mrf.mxu0 }
 0x450   :  { %v1495_v7 = vpack.c.bf16 %v1467_v3, %v1466_v2  ;;  %v1366_v30 = vadd.f32 %v2137_v4, %v2826_v19 }
 0x451   :  { %v2139_v48 = vpop.f32.mrf.mxu0 }
 0x452   :  { %v2140_v31 = vadd.f32 %v2139_v48, %v2138_v5  ;;  %2328 = vmatmul.mubr.msk.bf16.gmra.mxu1 %vm869_vm0, %v1495_v7  ;;  %v1468_v51 = vmax.f32 %v1366_v30, 0.0 }
 0x453   :  { %v2141_v35 = vpop.f32.mrf.mxu0 }
 0x454   :  { %v1369_v50 = vadd.f32 %v2140_v31, %v2826_v19 }
 0x455   :  { %v2142_v52 = vpop.f32.mrf.mxu0 }
 0x456   :  { %v1469_v44 = vmax.f32 %v1369_v50, 0.0  ;;  %v2143_v9 = vadd.f32 %v2142_v52, %v2141_v35 }
 0x457   :  { %v2144_v10 = vpop.f32.mrf.mxu0 }
 0x458   :  { %v1496_v11 = vpack.c.bf16 %v1469_v44, %v1468_v51  ;;  %v1374_v13 = vadd.f32 %v2143_v9, %v2826_v19 }
 0x459   :  { %v2145_v12 = vpop.f32.mrf.mxu0 }
 0x45a   :  { %v2146_v14 = vadd.f32 %v2145_v12, %v2144_v10  ;;  %2331 = vmatprep.mubr.msk.bf16.mxu1 %vm869_vm0, %v1496_v11  ;;  %v1470_v18 = vmax.f32 %v1374_v13, 0.0 }
 0x45b   :  { %v2147_v15 = vpop.f32.mrf.mxu0 }
 0x45c   :  { %v1377_v16 = vadd.f32 %v2146_v14, %v2826_v19 }
 0x45d   :  { %v2148_v17 = vpop.f32.mrf.mxu0 }
 0x45e   :  { %v1471_v20 = vmax.f32 %v1377_v16, 0.0  ;;  %v2149_v21 = vadd.f32 %v2148_v17, %v2147_v15 }
 0x45f   :  { %v2150_v22 = vpop.f32.mrf.mxu0 }
 0x460   :  { %v1497_v23 = vpack.c.bf16 %v1471_v20, %v1470_v18  ;;  %v1382_v26 = vadd.f32 %v2149_v21, %v2826_v19 }
 0x461   :  { %v2151_v25 = vpop.f32.mrf.mxu0 }
 0x462   :  { %v2152_v27 = vadd.f32 %v2151_v25, %v2150_v22  ;;  %2332 = vmatmul.mubr.msk.bf16.gmra.mxu1 %vm869_vm0, %v1497_v23  ;;  %v1472_v33 = vmax.f32 %v1382_v26, 0.0 }
 0x463   :  { %v2153_v28 = vpop.f32.mrf.mxu0 }
 0x464   :  { %v1385_v29 = vadd.f32 %v2152_v27, %v2826_v19 }
 0x465   :  { %v2154_v32 = vpop.f32.mrf.mxu0 }
 0x466   :  { %v1473_v36 = vmax.f32 %v1385_v29, 0.0  ;;  %v2155_v37 = vadd.f32 %v2154_v32, %v2153_v28 }
 0x467   :  { %v2156_v38 = vpop.f32.mrf.mxu0 }
 0x468   :  { %v1498_v39 = vpack.c.bf16 %v1473_v36, %v1472_v33  ;;  %v1390_v41 = vadd.f32 %v2155_v37, %v2826_v19 }
 0x469   :  { %v2157_v40 = vpop.f32.mrf.mxu0 }
 0x46a   :  { %v2158_v42 = vadd.f32 %v2157_v40, %v2156_v38  ;;  %2335 = vmatprep.mubr.msk.bf16.mxu1 %vm869_vm0, %v1498_v39  ;;  %v1474_v34 = vmax.f32 %v1390_v41, 0.0 }
 0x46b   :  { %v2159_v43 = vpop.f32.mrf.mxu0 }
 0x46c   :  { %v1393_v6 = vadd.f32 %v2158_v42, %v2826_v19 }
 0x46d   :  { %v2160_v8 = vpop.f32.mrf.mxu0 }
 0x46e   :  { %v1475_v45 = vmax.f32 %v1393_v6, 0.0  ;;  %v2161_v46 = vadd.f32 %v2160_v8, %v2159_v43 }
 0x46f   :  { %v2162_v24 = vpop.f32.mrf.mxu0 }
 0x470   :  { %v1499_v47 = vpack.c.bf16 %v1475_v45, %v1474_v34  ;;  %v1398_v53 = vadd.f32 %v2161_v46, %v2826_v19 }
 0x471   :  { %v2163_v49 = vpop.f32.mrf.mxu0 }
 0x472   :  { %v2164_v54 = vadd.f32 %v2163_v49, %v2162_v24  ;;  %2336 = vmatmul.mubr.msk.bf16.gmra.mxu1 %vm869_vm0, %v1499_v47  ;;  %v1476_v58 = vmax.f32 %v1398_v53, 0.0 }
 0x473   :  { %v2165_v55 = vpop.f32.mrf.mxu0 }
 0x474   :  { %v1401_v56 = vadd.f32 %v2164_v54, %v2826_v19 }
 0x475   :  { %v2166_v57 = vpop.f32.mrf.mxu0 }
 0x476   :  { %v1477_v59 = vmax.f32 %v1401_v56, 0.0  ;;  %v2167_v60 = vadd.f32 %v2166_v57, %v2165_v55 }
 0x477   :  { %v2168_v61 = vpop.f32.mrf.mxu0 }
 0x478   :  { %v1500_v62 = vpack.c.bf16 %v1477_v59, %v1476_v58  ;;  %v1406_v0 = vadd.f32 %v2167_v60, %v2826_v19 }
 0x479   :  { %v2169_v63 = vpop.f32.mrf.mxu0 }
 0x47a   :  { %v2170_v1 = vadd.f32 %v2169_v63, %v2168_v61  ;;  %2339 = vmatprep.mubr.msk.bf16.mxu1 %vm869_vm0, %v1500_v62  ;;  %v1478_v5 = vmax.f32 %v1406_v0, 0.0 }
 0x47b   :  { %v2171_v2 = vpop.f32.mrf.mxu0 }
 0x47c   :  { %v1409_v3 = vadd.f32 %v2170_v1, %v2826_v19 }
 0x47d   :  { %v2172_v4 = vpop.f32.mrf.mxu0 }
 0x47e   :  { %v1479_v7 = vmax.f32 %v1409_v3, 0.0  ;;  %v2173_v48 = vadd.f32 %v2172_v4, %v2171_v2 }
 0x47f   :  { %v2174_v30 = vpop.f32.mrf.mxu0 }
 0x480   :  { %v1501_v31 = vpack.c.bf16 %v1479_v7, %v1478_v5  ;;  %v1414_v50 = vadd.f32 %v2173_v48, %v2826_v19 }
 0x481   :  { %v2175_v35 = vpop.f32.mrf.mxu0 }
 0x482   :  { %v2176_v52 = vadd.f32 %v2175_v35, %v2174_v30  ;;  %2340 = vmatmul.mubr.msk.bf16.gmra.mxu1 %vm869_vm0, %v1501_v31  ;;  %v1480_v10 = vmax.f32 %v1414_v50, 0.0  ;;  %v2879_v31 = vld [vmem:[%s2926_s7] ss:$0 sm:$0xff]  ;;  %s2530_s7 = smov [#allocation7]  }
 0x483   :  { %v2177_v51 = vpop.f32.mrf.mxu0  ;;  %s1793_s28 = sshll.u32 %s2530_s7, 4  ;;  %s1794_s28 = int_to_ptr.vmem [resolvable:$true] %s1793_s28 }
 0x484   :  { %v1417_v44 = vadd.f32 %v2176_v52, %v2826_v19  ;;  %s2498_s29 = scalar_lea.vmem %s1794_s28, 4096  ;;  %p2503_p11 = scmp.lt.s32.totalorder %s1794_s28, %s1794_s28 }
 0x485   :  { %v2178_v9 = vpop.f32.mrf.mxu0  ;;  %p2499_p10 = scmp.ne.s32.totalorder %s1794_s28, %s2498_s29  ;;  %p2504_p12 = scmp.lt.s32.totalorder %s2498_s29, %s2498_s29 }
 0x486   :  { %v1481_v11 = vmax.f32 %v1417_v44, 0.0  ;;  %v2179_v12 = vadd.f32 %v2178_v9, %v2177_v51 }
 0x487   :  { %v2180_v13 = vpop.f32.mrf.mxu0  ;;  %p2505_p13 = por %p2504_p12, %p2503_p11 }
 0x488   :  { %v1502_v14 = vpack.c.bf16 %v1481_v11, %v1480_v10  ;;  %v1422_v16 = vadd.f32 %v2179_v12, %v2826_v19 }
 0x489   :  { %v2181_v15 = vpop.f32.mrf.mxu0  ;;  %p2506_p0 = pnand %p2505_p13, %p2499_p10 }
 0x48a   :  { %v2182_v17 = vadd.f32 %v2181_v15, %v2180_v13  ;;  %2343 = vmatprep.mubr.msk.bf16.mxu1 %vm869_vm0, %v1502_v14  ;;  %v1482_v22 = vmax.f32 %v1422_v16, 0.0 }
 0x48b   :  { %v2183_v18 = vpop.f32.mrf.mxu0 }
 0x48c   :  { %v1425_v20 = vadd.f32 %v2182_v17, %v2826_v19 }
 0x48d   :  { %v2184_v21 = vpop.f32.mrf.mxu0 }
 0x48e   :  { %v1483_v23 = vmax.f32 %v1425_v20, 0.0  ;;  %v2185_v25 = vadd.f32 %v2184_v21, %v2183_v18 }
 0x48f   :  { %v2186_v26 = vpop.f32.mrf.mxu0 }
 0x490   :  { %v1503_v27 = vpack.c.bf16 %v1483_v23, %v1482_v22  ;;  %v1430_v29 = vadd.f32 %v2185_v25, %v2826_v19 }
 0x491   :  { %v2187_v28 = vpop.f32.mrf.mxu0 }
 0x492   :  { %v2188_v32 = vadd.f32 %v2187_v28, %v2186_v26  ;;  %2344 = vmatmul.mubr.msk.bf16.gmra.mxu1 %vm869_vm0, %v1503_v27  ;;  %v1484_v38 = vmax.f32 %v1430_v29, 0.0 }
 0x493   :  { %v2189_v33 = vpop.f32.mrf.mxu0 }
 0x494   :  { %v1433_v36 = vadd.f32 %v2188_v32, %v2826_v19 }
 0x495   :  { %v2190_v37 = vpop.f32.mrf.mxu0 }
 0x496   :  { %v1485_v39 = vmax.f32 %v1433_v36, 0.0  ;;  %v2191_v40 = vadd.f32 %v2190_v37, %v2189_v33 }
 0x497   :  { %v2192_v41 = vpop.f32.mrf.mxu0 }
 0x498   :  { %v1504_v42 = vpack.c.bf16 %v1485_v39, %v1484_v38  ;;  %v1438_v6 = vadd.f32 %v2191_v40, %v2826_v19 }
 0x499   :  { %v2193_v43 = vpop.f32.mrf.mxu0 }
 0x49a   :  { %v2194_v8 = vadd.f32 %v2193_v43, %v2192_v41  ;;  %2347 = vmatprep.mubr.msk.bf16.mxu1 %vm869_vm0, %v1504_v42  ;;  %v1486_v24 = vmax.f32 %v1438_v6, 0.0 }
 0x49b   :  { %v2195_v34 = vpop.f32.mrf.mxu0 }
 0x49c   :  { %v1441_v45 = vadd.f32 %v2194_v8, %v2826_v19 }
 0x49d   :  { %v2196_v46 = vpop.f32.mrf.mxu0 }
 0x49e   :  { %v1487_v47 = vmax.f32 %v1441_v45, 0.0  ;;  %v2197_v49 = vadd.f32 %v2196_v46, %v2195_v34 }
 0x49f   :  { %v2198_v53 = vpop.f32.mrf.mxu0 }
 0x4a0   :  { %v1505_v54 = vpack.c.bf16 %v1487_v47, %v1486_v24  ;;  %v1446_v56 = vadd.f32 %v2197_v49, %v2826_v19 }
 0x4a1   :  { %v2199_v55 = vpop.f32.mrf.mxu0 }
 0x4a2   :  { %v2200_v57 = vadd.f32 %v2199_v55, %v2198_v53  ;;  %2348 = vmatmul.mubr.msk.bf16.gmra.mxu1 %vm869_vm0, %v1505_v54  ;;  %v1488_v61 = vmax.f32 %v1446_v56, 0.0 }
 0x4a3   :  { %v2201_v58 = vpop.f32.mrf.mxu0 }
 0x4a4   :  { %v1449_v59 = vadd.f32 %v2200_v57, %v2826_v19 }
 0x4a5   :  { %v2202_v60 = vpop.f32.mrf.mxu0 }
 0x4a6   :  { %v1489_v62 = vmax.f32 %v1449_v59, 0.0  ;;  %v2203_v63 = vadd.f32 %v2202_v60, %v2201_v58 }
 0x4a7   :  { %v2204_v0 = vpop.f32.mrf.mxu0 }
 0x4a8   :  { %v1506_v1 = vpack.c.bf16 %v1489_v62, %v1488_v61  ;;  %v1454_v3 = vadd.f32 %v2203_v63, %v2826_v19 }
 0x4a9   :  { %v2205_v2 = vpop.f32.mrf.mxu0 }
 0x4aa   :  { %v2206_v4 = vadd.f32 %v2205_v2, %v2204_v0  ;;  %2351 = vmatprep.mubr.msk.bf16.mxu1 %vm869_vm0, %v1506_v1  ;;  %v1490_v7 = vmax.f32 %v1454_v3, 0.0 }
 0x4ac   :  { %v1457_v5 = vadd.f32 %v2206_v4, %v2826_v19 }
 0x4ae   :  { %v1491_v48 = vmax.f32 %v1457_v5, 0.0 }
 0x4b0   :  { %v1507_v30 = vpack.c.bf16 %v1491_v48, %v1490_v7 }
 0x4b2   :  { %2352 = vmatmul.mubr.msk.bf16.gmra.mxu1 %vm869_vm0, %v1507_v30 }
 0x502   :  { %v2325_v35 = vpop.f32.mrf.mxu1 }
 0x503   :  { %v1638_v50 = vadd.f32 %v2325_v35, %v2879_v31 }
 0x504   :  { %v1629_v52 = vpop.f32.mrf.mxu1 }
 0x505   :  { %1758 = vst [vmem:[#allocation7 + $0x10] sm:$0xff] %v1638_v50  ;;  %v1630_v51 = vadd.f32 %v2879_v31, %v1629_v52 }
 0x506   :  { %v2326_v44 = vpop.f32.mrf.mxu1 }
 0x507   :  { %1756 = vst [vmem:[#allocation7] sm:$0xff] %v1630_v51  ;;  %v1641_v19 = vadd.f32 %v2326_v44, %v2879_v31 }
 0x508   :  { %v1632_v9 = vpop.f32.mrf.mxu1 }
 0x509   :  { %1759 = vst [vmem:[#allocation7 + $0x18] sm:$0xff] %v1641_v19  ;;  %v1633_v10 = vadd.f32 %v2879_v31, %v1632_v9 }
 0x50b   :  { %1757 = vst [vmem:[#allocation7 + $0x8] sm:$0xff] %v1633_v10 }
 0x512   :  { %v2329_v11 = vpop.f32.mrf.mxu1 }
 0x513   :  { %v1654_v12 = vadd.f32 %v2329_v11, %v2879_v31 }
 0x514   :  { %v1645_v13 = vpop.f32.mrf.mxu1 }
 0x515   :  { %1762 = vst [vmem:[#allocation7 + $0x30] sm:$0xff] %v1654_v12  ;;  %v1646_v14 = vadd.f32 %v2879_v31, %v1645_v13 }
 0x516   :  { %v2330_v15 = vpop.f32.mrf.mxu1 }
 0x517   :  { %1760 = vst [vmem:[#allocation7 + $0x20] sm:$0xff] %v1646_v14  ;;  %v1657_v16 = vadd.f32 %v2330_v15, %v2879_v31 }
 0x518   :  { %v1648_v17 = vpop.f32.mrf.mxu1 }
 0x519   :  { %1763 = vst [vmem:[#allocation7 + $0x38] sm:$0xff] %v1657_v16  ;;  %v1649_v18 = vadd.f32 %v2879_v31, %v1648_v17 }
 0x51b   :  { %1761 = vst [vmem:[#allocation7 + $0x28] sm:$0xff] %v1649_v18 }
 0x522   :  { %v2333_v20 = vpop.f32.mrf.mxu1 }
 0x523   :  { %v1670_v21 = vadd.f32 %v2333_v20, %v2879_v31 }
 0x524   :  { %v1661_v22 = vpop.f32.mrf.mxu1 }
 0x525   :  { %1766 = vst [vmem:[#allocation7 + $0x50] sm:$0xff] %v1670_v21  ;;  %v1662_v23 = vadd.f32 %v2879_v31, %v1661_v22 }
 0x526   :  { %v2334_v25 = vpop.f32.mrf.mxu1 }
 0x527   :  { %1764 = vst [vmem:[#allocation7 + $0x40] sm:$0xff] %v1662_v23  ;;  %v1673_v26 = vadd.f32 %v2334_v25, %v2879_v31 }
 0x528   :  { %v1664_v27 = vpop.f32.mrf.mxu1 }
 0x529   :  { %1767 = vst [vmem:[#allocation7 + $0x58] sm:$0xff] %v1673_v26  ;;  %v1665_v28 = vadd.f32 %v2879_v31, %v1664_v27 }
 0x52b   :  { %1765 = vst [vmem:[#allocation7 + $0x48] sm:$0xff] %v1665_v28 }
 0x532   :  { %v2337_v29 = vpop.f32.mrf.mxu1 }
 0x533   :  { %v1686_v32 = vadd.f32 %v2337_v29, %v2879_v31 }
 0x534   :  { %v1677_v33 = vpop.f32.mrf.mxu1 }
 0x535   :  { %1770 = vst [vmem:[#allocation7 + $0x70] sm:$0xff] %v1686_v32  ;;  %v1678_v36 = vadd.f32 %v2879_v31, %v1677_v33 }
 0x536   :  { %v2338_v37 = vpop.f32.mrf.mxu1 }
 0x537   :  { %1768 = vst [vmem:[#allocation7 + $0x60] sm:$0xff] %v1678_v36  ;;  %v1689_v38 = vadd.f32 %v2338_v37, %v2879_v31 }
 0x538   :  { %v1680_v39 = vpop.f32.mrf.mxu1 }
 0x539   :  { %1771 = vst [vmem:[#allocation7 + $0x78] sm:$0xff] %v1689_v38  ;;  %v1681_v40 = vadd.f32 %v2879_v31, %v1680_v39 }
 0x53b   :  { %1769 = vst [vmem:[#allocation7 + $0x68] sm:$0xff] %v1681_v40 }
 0x542   :  { %v2341_v41 = vpop.f32.mrf.mxu1 }
 0x543   :  { %v1702_v42 = vadd.f32 %v2341_v41, %v2879_v31 }
 0x544   :  { %v1693_v43 = vpop.f32.mrf.mxu1 }
 0x545   :  { %1774 = vst [vmem:[#allocation7 + $0x90] sm:$0xff] %v1702_v42  ;;  %v1694_v6 = vadd.f32 %v2879_v31, %v1693_v43 }
 0x546   :  { %v2342_v8 = vpop.f32.mrf.mxu1 }
 0x547   :  { %1772 = vst [vmem:[#allocation7 + $0x80] sm:$0xff] %v1694_v6  ;;  %v1705_v34 = vadd.f32 %v2342_v8, %v2879_v31 }
 0x548   :  { %v1696_v45 = vpop.f32.mrf.mxu1 }
 0x549   :  { %1775 = vst [vmem:[#allocation7 + $0x98] sm:$0xff] %v1705_v34  ;;  %v1697_v46 = vadd.f32 %v2879_v31, %v1696_v45 }
 0x54b   :  { %1773 = vst [vmem:[#allocation7 + $0x88] sm:$0xff] %v1697_v46 }
 0x552   :  { %v2345_v24 = vpop.f32.mrf.mxu1 }
 0x553   :  { %v1718_v47 = vadd.f32 %v2345_v24, %v2879_v31 }
 0x554   :  { %v1709_v49 = vpop.f32.mrf.mxu1 }
 0x555   :  { %1778 = vst [vmem:[#allocation7 + $0xb0] sm:$0xff] %v1718_v47  ;;  %v1710_v53 = vadd.f32 %v2879_v31, %v1709_v49 }
 0x556   :  { %v2346_v54 = vpop.f32.mrf.mxu1 }
 0x557   :  { %1776 = vst [vmem:[#allocation7 + $0xa0] sm:$0xff] %v1710_v53  ;;  %v1721_v55 = vadd.f32 %v2346_v54, %v2879_v31 }
 0x558   :  { %v1712_v56 = vpop.f32.mrf.mxu1 }
 0x559   :  { %1779 = vst [vmem:[#allocation7 + $0xb8] sm:$0xff] %v1721_v55  ;;  %v1713_v57 = vadd.f32 %v2879_v31, %v1712_v56 }
 0x55b   :  { %1777 = vst [vmem:[#allocation7 + $0xa8] sm:$0xff] %v1713_v57 }
 0x562   :  { %v2349_v58 = vpop.f32.mrf.mxu1 }
 0x563   :  { %v1734_v59 = vadd.f32 %v2349_v58, %v2879_v31 }
 0x564   :  { %v1725_v60 = vpop.f32.mrf.mxu1 }
 0x565   :  { %1782 = vst [vmem:[#allocation7 + $0xd0] sm:$0xff] %v1734_v59  ;;  %v1726_v61 = vadd.f32 %v2879_v31, %v1725_v60 }
 0x566   :  { %v2350_v62 = vpop.f32.mrf.mxu1 }
 0x567   :  { %1780 = vst [vmem:[#allocation7 + $0xc0] sm:$0xff] %v1726_v61  ;;  %v1737_v63 = vadd.f32 %v2350_v62, %v2879_v31 }
 0x568   :  { %v1728_v0 = vpop.f32.mrf.mxu1 }
 0x569   :  { %1783 = vst [vmem:[#allocation7 + $0xd8] sm:$0xff] %v1737_v63  ;;  %v1729_v1 = vadd.f32 %v2879_v31, %v1728_v0 }
 0x56b   :  { %1781 = vst [vmem:[#allocation7 + $0xc8] sm:$0xff] %v1729_v1 }
 0x572   :  { %v2353_v2 = vpop.f32.mrf.mxu1 }
 0x573   :  { %v1750_v3 = vadd.f32 %v2353_v2, %v2879_v31 }
 0x574   :  { %v1741_v4 = vpop.f32.mrf.mxu1 }
 0x575   :  { %1786 = vst [vmem:[#allocation7 + $0xf0] sm:$0xff] %v1750_v3  ;;  %v1742_v5 = vadd.f32 %v2879_v31, %v1741_v4 }
 0x576   :  { %v2354_v7 = vpop.f32.mrf.mxu1 }
 0x577   :  { %1784 = vst [vmem:[#allocation7 + $0xe0] sm:$0xff] %v1742_v5  ;;  %v1753_v48 = vadd.f32 %v2354_v7, %v2879_v31 }
 0x578   :  { %v1744_v30 = vpop.f32.mrf.mxu1 }
 0x579   :  { %1787 = vst [vmem:[#allocation7 + $0xf8] sm:$0xff] %v1753_v48  ;;  %v1745_v35 = vadd.f32 %v2879_v31, %v1744_v30 }
 0x57b   :  { %1785 = vst [vmem:[#allocation7 + $0xe8] sm:$0xff] %v1745_v35 }
 0x57c   :  { %2509 = shalt.err (!%p2506_p0)
}
 0x57d   :  { %1799 = dma.vmem_to_hbm [thread:$0]  %s1794_s28, 4096, %s2927_s8, [#allocation4], %s2528_s15, %s2528_s15, %s2529_s16  }
 0x57e   :  { %2522 = dma.done.wait [#allocation4], 4096  }
 0x57f   :  { %2523 = vsyncadd [#allocation4], 4294963200 }
 0x580   :  { %1803 = vsyncpa [#allocation3], 1 }
 0x581   :  { %1804 = vsyncpa [#allocation6], 1 }
 0x582   :  { %1805 = vsyncpa [#allocation4], 1 }

// kernel: tpu_custom_call.1
= control target key start
LH: loop header
LB: loop body
LE: loop exit
PB: predicated region body
PF: predicated region fallthrough
CT: control target
= control target key end

     0   :  { %13 = vsyncpa [#allocation3], 0  ;;  %s2919_s0 = inlined_call_operand.hbm [shape: bf16[256,128], index: 0, kind: input, shape index: {}]   ;;  %s2920_s1 = inlined_call_operand.hbm [shape: bf16[256,256], index: 1, kind: input, shape index: {}]   ;;  %s2921_s2 = inlined_call_operand.vmem [shape: bf16[128,64], index: 2, kind: input, shape index: {}]   ;;  %s2922_s3 = inlined_call_operand.vmem [shape: f32[1,64], index: 3, kind: input, shape index: {}]   ;;  %s2923_s4 = inlined_call_operand.vmem [shape: bf16[64,64], index: 4, kind: input, shape index: {}]   ;;  %s2924_s5 = inlined_call_operand.vmem [shape: f32[1,64], index: 5, kind: input, shape index: {}]   ;;  %s2925_s6 = inlined_call_operand.vmem [shape: bf16[64,128], index: 6, kind: input, shape index: {}]   ;;  %s2926_s7 = inlined_call_operand.vmem [shape: f32[1,128], index: 7, kind: input, shape index: {}]   ;;  %s2927_s8 = inlined_call_operand.hbm [shape: f32[256,128], index: 8, kind: output, shape index: {}]  }
   0x1   :  { %14 = vsyncpa [#allocation6], 0 }
   0x2   :  { %15 = vsyncpa [#allocation4], 0  ;;  %s2524_s27 = smov [#allocation2]  }
   0x3   :  { %s21_s28 = sshll.u32 %s2524_s27, 4  ;;  %s22_s28 = int_to_ptr.vmem [resolvable:$true] %s21_s28 }
   0x4   :  { %s2466_s29 = scalar_lea.vmem %s22_s28, 2048  ;;  %p2471_p1 = scmp.lt.s32.totalorder %s22_s28, %s22_s28 }
   0x5   :  { %p2467_p0 = scmp.ne.s32.totalorder %s22_s28, %s2466_s29  ;;  %p2472_p2 = scmp.lt.s32.totalorder %s2466_s29, %s2466_s29 }
   0x7   :  { %p2473_p3 = por %p2472_p2, %p2471_p1 }
   0x9   :  { %p2474_p4 = pnand %p2473_p3, %p2467_p0 }
   0xb   :  { %2477 = shalt.err (!%p2474_p4)
}
   0xc   :  { %s2525_s30 = smov 64   ;;  %s2526_s9 = smov 4  }
   0xd   :  { %27 = dma.hbm_to_vmem [thread:$0]  %s2919_s0, 2048, %s22_s28, [#allocation3], %s2525_s30, %s2525_s30, %s2526_s9  }
   0xe   :  { %s2527_s12 = smov [#allocation5]  }
   0xf   :  { %s33_s13 = sshll.u32 %s2527_s12, 4  ;;  %s34_s13 = int_to_ptr.vmem [resolvable:$true] %s33_s13 }
  0x10   :  { %s2486_s14 = scalar_lea.vmem %s34_s13, 4096  ;;  %p2491_p6 = scmp.lt.s32.totalorder %s34_s13, %s34_s13 }
  0x11   :  { %p2487_p5 = scmp.ne.s32.totalorder %s34_s13, %s2486_s14  ;;  %p2492_p7 = scmp.lt.s32.totalorder %s2486_s14, %s2486_s14 }
  0x13   :  { %p2493_p8 = por %p2492_p7, %p2491_p6 }
  0x15   :  { %p2494_p9 = pnand %p2493_p8, %p2487_p5 }
  0x17   :  { %2497 = shalt.err (!%p2494_p9)
}
  0x18   :  { %s2528_s15 = smov 128   ;;  %s2529_s16 = smov 8  }
  0x19   :  { %39 = dma.hbm_to_vmem [thread:$0]  %s2920_s1, 4096, %s34_s13, [#allocation6], %s2528_s15, %s2528_s15, %s2529_s16  }
  0x1a   :  { %2518 = dma.done.wait [#allocation3], 2048  }
  0x1b   :  { %2519 = vsyncadd [#allocation3], 4294965248 }
  0x1c   :  { %2520 = dma.done.wait [#allocation6], 4096  }
  0x1d   :  { %2521 = vsyncadd [#allocation6], 4294963200  ;;  %v2378_v0 = vld [vmem:[%s2921_s2 + $0x38] sm:$0xff]   ;;  %v2379_v1 = vld [vmem:[%s2921_s2 + $0x30] sm:$0xff]   ;;  %vm869_vm0 = vcmask 523264  }
  0x1e   :  { %2227 = vmatprep.subr.bf16.mxu0 %v2378_v0  ;;  %2355 = vmatprep.subr.bf16.mxu1 %v2378_v0  ;;  %v2380_v2 = vld [vmem:[%s2921_s2 + $0x28] sm:$0xff]   ;;  %v2381_v3 = vld [vmem:[%s2921_s2 + $0x20] sm:$0xff]   ;;  %v2382_v6 = vld [vmem:[%s2921_s2 + $0x18] sm:$0xff]  }
  0x1f   :  { %2228 = vmatpush3.bf16.msra.mxu0 %v2378_v0  ;;  %2363 = vmatpush3.bf16.msra.mxu1 %v2378_v0  ;;  %v2386_v4 = vld [vmem:[#allocation2] sm:$0xff]   ;;  %v2383_v7 = vld [vmem:[%s2921_s2 + $0x10] sm:$0xff]   ;;  %v2384_v8 = vld [vmem:[%s2921_s2 + $0x8] sm:$0xff]  }
  0x20   :  { %2229 = vmatprep.subr.bf16.mxu0 %v2379_v1  ;;  %2356 = vmatprep.subr.bf16.mxu1 %v2379_v1  ;;  %v2387_v5 = vld [vmem:[#allocation2 + $0x40] sm:$0xff]   ;;  %v2388_v10 = vld [vmem:[#allocation2 + $0x8] sm:$0xff]   ;;  %v2390_v12 = vld [vmem:[#allocation2 + $0x10] sm:$0xff]  }
  0x21   :  { %2243 = vmatprep.mubr.bf16.mxu0 %v2386_v4  ;;  %2259 = vmatprep.mubr.bf16.mxu1 %v2387_v5  ;;  %v2385_v9 = vld [vmem:[%s2921_s2] sm:$0xff]   ;;  %v2389_v11 = vld [vmem:[#allocation2 + $0x48] sm:$0xff]   ;;  %v2391_v13 = vld [vmem:[#allocation2 + $0x50] sm:$0xff]  }
  0x22   :  { %v2392_v14 = vld [vmem:[#allocation2 + $0x18] sm:$0xff]   ;;  %v2394_v16 = vld [vmem:[#allocation2 + $0x20] sm:$0xff]   ;;  %v2396_v18 = vld [vmem:[#allocation2 + $0x28] sm:$0xff]  }
  0x23   :  { %2230 = vmatpush3.bf16.msra.mxu0 %v2379_v1  ;;  %2364 = vmatpush3.bf16.msra.mxu1 %v2379_v1  ;;  %v2393_v15 = vld [vmem:[#allocation2 + $0x58] sm:$0xff]   ;;  %v2395_v17 = vld [vmem:[#allocation2 + $0x60] sm:$0xff]   ;;  %v2397_v19 = vld [vmem:[#allocation2 + $0x68] sm:$0xff]  }
  0x24   :  { %2231 = vmatprep.subr.bf16.mxu0 %v2380_v2  ;;  %2357 = vmatprep.subr.bf16.mxu1 %v2380_v2  ;;  %v2398_v20 = vld [vmem:[#allocation2 + $0x30] sm:$0xff]   ;;  %v2400_v22 = vld [vmem:[#allocation2 + $0x38] sm:$0xff]   ;;  %v2609_v24 = vld [vmem:[#allocation5 + $0x4] ss:$8 sps:$4 sm:$0xff]  }
  0x25   :  { %v2399_v21 = vld [vmem:[#allocation2 + $0x70] sm:$0xff]   ;;  %v2401_v23 = vld [vmem:[#allocation2 + $0x78] sm:$0xff]  }
  0x27   :  { %2232 = vmatpush3.bf16.msra.mxu0 %v2380_v2  ;;  %2365 = vmatpush3.bf16.msra.mxu1 %v2380_v2 }
  0x28   :  { %2233 = vmatprep.subr.bf16.mxu0 %v2381_v3  ;;  %2358 = vmatprep.subr.bf16.mxu1 %v2381_v3 }
  0x2b   :  { %2234 = vmatpush3.bf16.msra.mxu0 %v2381_v3  ;;  %2366 = vmatpush3.bf16.msra.mxu1 %v2381_v3 }
  0x2c   :  { %2235 = vmatprep.subr.bf16.mxu0 %v2382_v6  ;;  %2359 = vmatprep.subr.bf16.mxu1 %v2382_v6 }
  0x2f   :  { %2236 = vmatpush3.bf16.msra.mxu0 %v2382_v6  ;;  %2367 = vmatpush3.bf16.msra.mxu1 %v2382_v6 }
  0x30   :  { %2237 = vmatprep.subr.bf16.mxu0 %v2383_v7  ;;  %2360 = vmatprep.subr.bf16.mxu1 %v2383_v7 }
  0x33   :  { %2238 = vmatpush3.bf16.msra.mxu0 %v2383_v7  ;;  %2368 = vmatpush3.bf16.msra.mxu1 %v2383_v7 }
  0x34   :  { %2239 = vmatprep.subr.bf16.mxu0 %v2384_v8  ;;  %2361 = vmatprep.subr.bf16.mxu1 %v2384_v8 }
  0x37   :  { %2240 = vmatpush3.bf16.msra.mxu0 %v2384_v8  ;;  %2369 = vmatpush3.bf16.msra.mxu1 %v2384_v8 }
  0x38   :  { %2241 = vmatprep.subr.bf16.mxu0 %v2385_v9  ;;  %2362 = vmatprep.subr.bf16.mxu1 %v2385_v9 }
  0x3b   :  { %2242 = vmatpush3.bf16.msra.mxu0 %v2385_v9  ;;  %2370 = vmatpush3.bf16.msra.mxu1 %v2385_v9  ;;  %v2612_v9 = vld [vmem:[#allocation5] ss:$8 sps:$4 sm:$0xff]  }
  0x3e   :  { %2244 = vmatmul.mubr.bf16.vlgmr.msra.gmra.mxu0 %v2388_v10  ;;  %2260 = vmatmul.mubr.bf16.vlgmr.msra.gmra.mxu1 %v2389_v11  ;;  %v2614_v10 = vld [vmem:[#allocation5 + $0x14] ss:$8 sps:$4 sm:$0xff]   ;;  %v2618_v11 = vld [vmem:[#allocation5 + $0x10] ss:$8 sps:$4 sm:$0xff]  }
  0x3f   :  { %2247 = vmatprep.mubr.bf16.mxu0 %v2390_v12  ;;  %2263 = vmatprep.mubr.bf16.mxu1 %v2391_v13  ;;  %v2620_v12 = vld [vmem:[#allocation5 + $0x24] ss:$8 sps:$4 sm:$0xff]   ;;  %v2624_v13 = vld [vmem:[#allocation5 + $0x20] ss:$8 sps:$4 sm:$0xff]  }
  0x46   :  { %2248 = vmatmul.mubr.bf16.gmra.mxu0 %v2392_v14  ;;  %2264 = vmatmul.mubr.bf16.gmra.mxu1 %v2393_v15  ;;  %v2626_v14 = vld [vmem:[#allocation5 + $0x34] ss:$8 sps:$4 sm:$0xff]   ;;  %v2630_v15 = vld [vmem:[#allocation5 + $0x30] ss:$8 sps:$4 sm:$0xff]  }
  0x47   :  { %2251 = vmatprep.mubr.bf16.mxu0 %v2394_v16  ;;  %2267 = vmatprep.mubr.bf16.mxu1 %v2395_v17  ;;  %v2632_v16 = vld [vmem:[#allocation5 + $0x44] ss:$8 sps:$4 sm:$0xff]   ;;  %v2636_v17 = vld [vmem:[#allocation5 + $0x40] ss:$8 sps:$4 sm:$0xff]  }
  0x4e   :  { %2252 = vmatmul.mubr.bf16.gmra.mxu0 %v2396_v18  ;;  %2268 = vmatmul.mubr.bf16.gmra.mxu1 %v2397_v19  ;;  %v2638_v18 = vld [vmem:[#allocation5 + $0x54] ss:$8 sps:$4 sm:$0xff]   ;;  %v2642_v19 = vld [vmem:[#allocation5 + $0x50] ss:$8 sps:$4 sm:$0xff]  }
  0x4f   :  { %2255 = vmatprep.mubr.bf16.mxu0 %v2398_v20  ;;  %2271 = vmatprep.mubr.bf16.mxu1 %v2399_v21  ;;  %v2644_v20 = vld [vmem:[#allocation5 + $0x64] ss:$8 sps:$4 sm:$0xff]   ;;  %v2648_v21 = vld [vmem:[#allocation5 + $0x60] ss:$8 sps:$4 sm:$0xff]  }
  0x56   :  { %2256 = vmatmul.mubr.bf16.gmra.mxu0 %v2400_v22  ;;  %2272 = vmatmul.mubr.bf16.gmra.mxu1 %v2401_v23  ;;  %v2650_v22 = vld [vmem:[#allocation5 + $0x74] ss:$8 sps:$4 sm:$0xff]   ;;  %v2654_v23 = vld [vmem:[#allocation5 + $0x70] ss:$8 sps:$4 sm:$0xff]  }
  0x57   :  { %660 = vmatprep.mubr.bf16.mxu1 %v2609_v24 }
  0xfe   :  { %v2245_v25 = vpop.f32.mrf.mxu0  ;;  %v2261_v26 = vpop.f32.mrf.mxu1 }
 0x100   :  { %v286_v27 = vpop.f32.mrf.mxu0  ;;  %v350_v28 = vpop.f32.mrf.mxu1 }
 0x102   :  { %v2246_v29 = vpop.f32.mrf.mxu0  ;;  %v2262_v30 = vpop.f32.mrf.mxu1 }
 0x103   :  { %v454_v5 = vpack.c.bf16 %v2262_v30, %v2261_v26  ;;  %v446_v6 = vpack.c.bf16 %v2246_v29, %v2245_v25  ;;  %v2656_v25 = vld [vmem:[#allocation5 + $0x84] ss:$8 sps:$4 sm:$0xff]   ;;  %v2660_v26 = vld [vmem:[#allocation5 + $0x80] ss:$8 sps:$4 sm:$0xff]   ;;  %v2450_v30 = vld [vmem:[%s2923_s4 + $0x18] sm:$0xff]  }
 0x104   :  { %v289_v31 = vpop.f32.mrf.mxu0  ;;  %v353_v32 = vpop.f32.mrf.mxu1  ;;  %v2668_v29 = vld [vmem:[#allocation5 + $0xa4] ss:$8 sps:$4 sm:$0xff]   ;;  %2275 = vmatprep.subr.bf16.mxu0 %v2450_v30 }
 0x105   :  { %v453_v7 = vpack.c.bf16 %v353_v32, %v350_v28  ;;  %v445_v8 = vpack.c.bf16 %v289_v31, %v286_v27  ;;  %v2662_v27 = vld [vmem:[#allocation5 + $0x94] ss:$8 sps:$4 sm:$0xff]   ;;  %v2666_v28 = vld [vmem:[#allocation5 + $0x90] ss:$8 sps:$4 sm:$0xff]   ;;  %2276 = vmatpush3.bf16.msra.mxu0 %v2450_v30  ;;  %v2678_v32 = vld [vmem:[#allocation5 + $0xa0] ss:$8 sps:$4 sm:$0xff]  }
 0x106   :  { %v2249_v33 = vpop.f32.mrf.mxu0  ;;  %v2265_v34 = vpop.f32.mrf.mxu1  ;;  %v2451_v31 = vld [vmem:[%s2923_s4 + $0x10] sm:$0xff]  }
 0x107   :  { %2277 = vmatprep.subr.bf16.mxu0 %v2451_v31 }
 0x108   :  { %v302_v35 = vpop.f32.mrf.mxu0  ;;  %v366_v36 = vpop.f32.mrf.mxu1 }
 0x109   :  { %2278 = vmatpush3.bf16.msra.mxu0 %v2451_v31 }
 0x10a   :  { %v2250_v37 = vpop.f32.mrf.mxu0  ;;  %v2266_v38 = vpop.f32.mrf.mxu1 }
 0x10b   :  { %v456_v1 = vpack.c.bf16 %v2266_v38, %v2265_v34  ;;  %v448_v2 = vpack.c.bf16 %v2250_v37, %v2249_v33  ;;  %v2680_v33 = vld [vmem:[#allocation5 + $0xb4] ss:$8 sps:$4 sm:$0xff]   ;;  %v2452_v34 = vld [vmem:[%s2923_s4 + $0x8] sm:$0xff]  }
 0x10c   :  { %v305_v39 = vpop.f32.mrf.mxu0  ;;  %v369_v40 = vpop.f32.mrf.mxu1  ;;  %2279 = vmatprep.subr.bf16.mxu0 %v2452_v34  ;;  %v2692_v37 = vld [vmem:[#allocation5 + $0xc4] ss:$8 sps:$4 sm:$0xff]   ;;  %v2696_v38 = vld [vmem:[#allocation5 + $0xc0] ss:$8 sps:$4 sm:$0xff]  }
 0x10d   :  { %v455_v3 = vpack.c.bf16 %v369_v40, %v366_v36  ;;  %v447_v4 = vpack.c.bf16 %v305_v39, %v302_v35  ;;  %2280 = vmatpush3.bf16.msra.mxu0 %v2452_v34  ;;  %v2453_v35 = vld [vmem:[%s2923_s4] sm:$0xff]   ;;  %v2690_v36 = vld [vmem:[#allocation5 + $0xb0] ss:$8 sps:$4 sm:$0xff]   ;;  %v2698_v39 = vld [vmem:[#allocation5 + $0xd4] ss:$8 sps:$4 sm:$0xff]  }
 0x10e   :  { %v2253_v41 = vpop.f32.mrf.mxu0  ;;  %v2269_v42 = vpop.f32.mrf.mxu1  ;;  %2281 = vmatprep.subr.bf16.mxu0 %v2453_v35  ;;  %v2702_v40 = vld [vmem:[#allocation5 + $0xd0] ss:$8 sps:$4 sm:$0xff]  }
 0x10f   :  { %2933 = vst [vmem:[#allocation11_spill] sm:$0xff] %v2702_v40 }
 0x110   :  { %v318_v43 = vpop.f32.mrf.mxu0  ;;  %v382_v44 = vpop.f32.mrf.mxu1 }
 0x111   :  { %2282 = vmatpush3.bf16.msra.mxu0 %v2453_v35 }
 0x112   :  { %v2254_v45 = vpop.f32.mrf.mxu0  ;;  %v2270_v46 = vpop.f32.mrf.mxu1 }
 0x113   :  { %v458_v61 = vpack.c.bf16 %v2270_v46, %v2269_v42  ;;  %v450_v62 = vpack.c.bf16 %v2254_v45, %v2253_v41  ;;  %v2704_v41 = vld [vmem:[#allocation5 + $0xe4] ss:$8 sps:$4 sm:$0xff]   ;;  %v2708_v42 = vld [vmem:[#allocation5 + $0xe0] ss:$8 sps:$4 sm:$0xff]  }
 0x114   :  { %v321_v47 = vpop.f32.mrf.mxu0  ;;  %v385_v48 = vpop.f32.mrf.mxu1  ;;  %2934 = vst [vmem:[#allocation12_spill] sm:$0xff] %v2704_v41  ;;  %2935 = vst [vmem:[#allocation13_spill] sm:$0xff] %v2708_v42 }
 0x115   :  { %v457_v63 = vpack.c.bf16 %v385_v48, %v382_v44  ;;  %v449_v0 = vpack.c.bf16 %v321_v47, %v318_v43  ;;  %v2710_v43 = vld [vmem:[#allocation5 + $0xf4] ss:$8 sps:$4 sm:$0xff]   ;;  %v2714_v44 = vld [vmem:[#allocation5 + $0xf0] ss:$8 sps:$4 sm:$0xff]   ;;  %v2720_v48 = vld [vmem:[%s2922_s3] ss:$0 sm:$0xff] }
 0x116   :  { %v2257_v49 = vpop.f32.mrf.mxu0  ;;  %v2273_v50 = vpop.f32.mrf.mxu1  ;;  %2936 = vst [vmem:[#allocation14_spill] sm:$0xff] %v2710_v43  ;;  %2937 = vst [vmem:[#allocation15_spill] sm:$0xff] %v2714_v44 }
 0x118   :  { %v334_v51 = vpop.f32.mrf.mxu0  ;;  %v398_v52 = vpop.f32.mrf.mxu1 }
 0x11a   :  { %v2258_v53 = vpop.f32.mrf.mxu0  ;;  %v2274_v54 = vpop.f32.mrf.mxu1 }
 0x11b   :  { %v452_v55 = vpack.c.bf16 %v2258_v53, %v2257_v49  ;;  %v460_v56 = vpack.c.bf16 %v2274_v54, %v2273_v50 }
 0x11c   :  { %v401_v57 = vpop.f32.mrf.mxu1  ;;  %v337_v58 = vpop.f32.mrf.mxu0 }
 0x11d   :  { %v459_v59 = vpack.c.bf16 %v401_v57, %v398_v52  ;;  %1963 = vmatprep.subr.bf16.mxu1 %v460_v56  ;;  %v451_v60 = vpack.c.bf16 %v337_v58, %v334_v51 }
 0x11e   :  { %1964 = vmatpush3.bf16.msra.mxu1 %v452_v55 }
 0x11f   :  { %1965 = vmatprep.subr.bf16.mxu1 %v459_v59 }
 0x122   :  { %1966 = vmatpush3.bf16.msra.mxu1 %v451_v60 }
 0x123   :  { %1967 = vmatprep.subr.bf16.mxu1 %v458_v61 }
 0x126   :  { %1968 = vmatpush3.bf16.msra.mxu1 %v450_v62 }
 0x127   :  { %1969 = vmatprep.subr.bf16.mxu1 %v457_v63 }
 0x12a   :  { %1970 = vmatpush3.bf16.msra.mxu1 %v449_v0 }
 0x12b   :  { %1971 = vmatprep.subr.bf16.mxu1 %v456_v1 }
 0x12e   :  { %1972 = vmatpush3.bf16.msra.mxu1 %v448_v2 }
 0x12f   :  { %1973 = vmatprep.subr.bf16.mxu1 %v455_v3 }
 0x132   :  { %1974 = vmatpush3.bf16.msra.mxu1 %v447_v4 }
 0x133   :  { %1975 = vmatprep.subr.bf16.mxu1 %v454_v5 }
 0x136   :  { %1976 = vmatpush3.bf16.msra.mxu1 %v446_v6 }
 0x137   :  { %1977 = vmatprep.subr.bf16.mxu1 %v453_v7 }
 0x13a   :  { %1978 = vmatpush3.bf16.msra.mxu1 %v445_v8 }
 0x13d   :  { %661 = vmatmul.mubr.bf16.vlgmr.msra.gmra.mxu1 %v2612_v9 }
 0x13e   :  { %668 = vmatprep.mubr.bf16.mxu1 %v2614_v10 }
 0x145   :  { %669 = vmatmul.mubr.bf16.gmra.mxu1 %v2618_v11 }
 0x146   :  { %676 = vmatprep.mubr.bf16.mxu1 %v2620_v12 }
 0x14d   :  { %677 = vmatmul.mubr.bf16.gmra.mxu1 %v2624_v13 }
 0x14e   :  { %684 = vmatprep.mubr.bf16.mxu1 %v2626_v14 }
 0x155   :  { %685 = vmatmul.mubr.bf16.gmra.mxu1 %v2630_v15 }
 0x156   :  { %692 = vmatprep.mubr.bf16.mxu1 %v2632_v16 }
 0x15d   :  { %693 = vmatmul.mubr.bf16.gmra.mxu1 %v2636_v17 }
 0x15e   :  { %700 = vmatprep.mubr.bf16.mxu1 %v2638_v18 }
 0x165   :  { %701 = vmatmul.mubr.bf16.gmra.mxu1 %v2642_v19 }
 0x166   :  { %708 = vmatprep.mubr.bf16.mxu1 %v2644_v20 }
 0x16d   :  { %709 = vmatmul.mubr.bf16.gmra.mxu1 %v2648_v21 }
 0x16e   :  { %716 = vmatprep.mubr.bf16.mxu1 %v2650_v22 }
 0x175   :  { %717 = vmatmul.mubr.bf16.gmra.mxu1 %v2654_v23 }
 0x176   :  { %724 = vmatprep.mubr.bf16.mxu1 %v2656_v25 }
 0x17d   :  { %725 = vmatmul.mubr.bf16.gmra.mxu1 %v2660_v26 }
 0x17e   :  { %732 = vmatprep.mubr.bf16.mxu1 %v2662_v27 }
 0x185   :  { %733 = vmatmul.mubr.bf16.gmra.mxu1 %v2666_v28 }
 0x186   :  { %740 = vmatprep.mubr.bf16.mxu1 %v2668_v29 }
 0x18d   :  { %741 = vmatmul.mubr.bf16.gmra.mxu1 %v2678_v32 }
 0x18e   :  { %748 = vmatprep.mubr.bf16.mxu1 %v2680_v33 }
 0x195   :  { %749 = vmatmul.mubr.bf16.gmra.mxu1 %v2690_v36 }
 0x196   :  { %756 = vmatprep.mubr.bf16.mxu1 %v2692_v37 }
 0x19d   :  { %757 = vmatmul.mubr.bf16.gmra.mxu1 %v2696_v38 }
 0x19e   :  { %764 = vmatprep.mubr.bf16.mxu1 %v2698_v39 }
 0x1a5   :  { %765 = vmatmul.mubr.bf16.gmra.mxu1 %v2702_v40 }
 0x1a6   :  { %772 = vmatprep.mubr.bf16.mxu1 %v2704_v41 }
 0x1ad   :  { %773 = vmatmul.mubr.bf16.gmra.mxu1 %v2708_v42 }
 0x1ae   :  { %780 = vmatprep.mubr.bf16.mxu1 %v2710_v43 }
 0x1b5   :  { %781 = vmatmul.mubr.bf16.gmra.mxu1 %v2714_v44 }
 0x1fd   :  { %v1979_v45 = vpop.f32.mrf.mxu1 }
 0x1ff   :  { %v1980_v46 = vpop.f32.mrf.mxu1 }
 0x200   :  { %v1981_v47 = vadd.f32 %v1980_v46, %v1979_v45 }
 0x201   :  { %v1982_v49 = vpop.f32.mrf.mxu1 }
 0x202   :  { %v663_v51 = vadd.f32 %v1981_v47, %v2720_v48 }
 0x203   :  { %v1983_v50 = vpop.f32.mrf.mxu1 }
 0x204   :  { %v1984_v52 = vadd.f32 %v1983_v50, %v1982_v49  ;;  %v789_v56 = vmax.f32 %v663_v51, 0.0 }
 0x205   :  { %v1985_v53 = vpop.f32.mrf.mxu1 }
 0x206   :  { %v666_v54 = vadd.f32 %v1984_v52, %v2720_v48 }
 0x207   :  { %v1986_v55 = vpop.f32.mrf.mxu1 }
 0x208   :  { %v790_v57 = vmax.f32 %v666_v54, 0.0  ;;  %v1987_v58 = vadd.f32 %v1986_v55, %v1985_v53 }
 0x209   :  { %v1988_v59 = vpop.f32.mrf.mxu1 }
 0x20a   :  { %v821_v60 = vpack.c.bf16 %v790_v57, %v789_v56  ;;  %v671_v62 = vadd.f32 %v1987_v58, %v2720_v48 }
 0x20b   :  { %v1989_v61 = vpop.f32.mrf.mxu1 }
 0x20c   :  { %v1990_v63 = vadd.f32 %v1989_v61, %v1988_v59  ;;  %2283 = vmatprep.mubr.msk.bf16.mxu0 %vm869_vm0, %v821_v60  ;;  %v791_v3 = vmax.f32 %v671_v62, 0.0 }
 0x20d   :  { %v1991_v0 = vpop.f32.mrf.mxu1 }
 0x20e   :  { %v674_v1 = vadd.f32 %v1990_v63, %v2720_v48 }
 0x20f   :  { %v1992_v2 = vpop.f32.mrf.mxu1 }
 0x210   :  { %v792_v4 = vmax.f32 %v674_v1, 0.0  ;;  %v1993_v5 = vadd.f32 %v1992_v2, %v1991_v0 }
 0x211   :  { %v1994_v6 = vpop.f32.mrf.mxu1 }
 0x212   :  { %v822_v7 = vpack.c.bf16 %v792_v4, %v791_v3  ;;  %v679_v30 = vadd.f32 %v1993_v5, %v2720_v48 }
 0x213   :  { %v1995_v8 = vpop.f32.mrf.mxu1 }
 0x214   :  { %v1996_v31 = vadd.f32 %v1995_v8, %v1994_v6  ;;  %2284 = vmatmul.mubr.msk.bf16.vlgmr.msra.gmra.mxu0 %vm869_vm0, %v822_v7  ;;  %v793_v46 = vmax.f32 %v679_v30, 0.0 }
 0x215   :  { %v1997_v34 = vpop.f32.mrf.mxu1 }
 0x216   :  { %v682_v35 = vadd.f32 %v1996_v31, %v2720_v48 }
 0x217   :  { %v1998_v45 = vpop.f32.mrf.mxu1 }
 0x218   :  { %v794_v47 = vmax.f32 %v682_v35, 0.0  ;;  %v1999_v49 = vadd.f32 %v1998_v45, %v1997_v34 }
 0x219   :  { %v2000_v50 = vpop.f32.mrf.mxu1 }
 0x21a   :  { %v823_v51 = vpack.c.bf16 %v794_v47, %v793_v46  ;;  %v687_v53 = vadd.f32 %v1999_v49, %v2720_v48 }
 0x21b   :  { %v2001_v52 = vpop.f32.mrf.mxu1 }
 0x21c   :  { %v2002_v54 = vadd.f32 %v2001_v52, %v2000_v50  ;;  %2287 = vmatprep.mubr.msk.bf16.mxu0 %vm869_vm0, %v823_v51  ;;  %v795_v58 = vmax.f32 %v687_v53, 0.0 }
 0x21d   :  { %v2003_v55 = vpop.f32.mrf.mxu1 }
 0x21e   :  { %v690_v56 = vadd.f32 %v2002_v54, %v2720_v48 }
 0x21f   :  { %v2004_v57 = vpop.f32.mrf.mxu1 }
 0x220   :  { %v796_v59 = vmax.f32 %v690_v56, 0.0  ;;  %v2005_v60 = vadd.f32 %v2004_v57, %v2003_v55 }
 0x221   :  { %v2006_v61 = vpop.f32.mrf.mxu1 }
 0x222   :  { %v824_v62 = vpack.c.bf16 %v796_v59, %v795_v58  ;;  %v695_v0 = vadd.f32 %v2005_v60, %v2720_v48 }
 0x223   :  { %v2007_v63 = vpop.f32.mrf.mxu1 }
 0x224   :  { %v2008_v1 = vadd.f32 %v2007_v63, %v2006_v61  ;;  %2288 = vmatmul.mubr.msk.bf16.gmra.mxu0 %vm869_vm0, %v824_v62  ;;  %v797_v5 = vmax.f32 %v695_v0, 0.0 }
 0x225   :  { %v2009_v2 = vpop.f32.mrf.mxu1 }
 0x226   :  { %v698_v3 = vadd.f32 %v2008_v1, %v2720_v48 }
 0x227   :  { %v2010_v4 = vpop.f32.mrf.mxu1 }
 0x228   :  { %v798_v6 = vmax.f32 %v698_v3, 0.0  ;;  %v2011_v7 = vadd.f32 %v2010_v4, %v2009_v2 }
 0x229   :  { %v2012_v8 = vpop.f32.mrf.mxu1 }
 0x22a   :  { %v825_v30 = vpack.c.bf16 %v798_v6, %v797_v5  ;;  %v703_v34 = vadd.f32 %v2011_v7, %v2720_v48 }
 0x22b   :  { %v2013_v31 = vpop.f32.mrf.mxu1 }
 0x22c   :  { %v2014_v35 = vadd.f32 %v2013_v31, %v2012_v8  ;;  %2291 = vmatprep.mubr.msk.bf16.mxu0 %vm869_vm0, %v825_v30  ;;  %v799_v49 = vmax.f32 %v703_v34, 0.0 }
 0x22d   :  { %v2015_v45 = vpop.f32.mrf.mxu1 }
 0x22e   :  { %v706_v46 = vadd.f32 %v2014_v35, %v2720_v48 }
 0x22f   :  { %v2016_v47 = vpop.f32.mrf.mxu1 }
 0x230   :  { %v800_v50 = vmax.f32 %v706_v46, 0.0  ;;  %v2017_v51 = vadd.f32 %v2016_v47, %v2015_v45 }
 0x231   :  { %v2018_v52 = vpop.f32.mrf.mxu1 }
 0x232   :  { %v826_v53 = vpack.c.bf16 %v800_v50, %v799_v49  ;;  %v711_v55 = vadd.f32 %v2017_v51, %v2720_v48 }
 0x233   :  { %v2019_v54 = vpop.f32.mrf.mxu1 }
 0x234   :  { %v2020_v56 = vadd.f32 %v2019_v54, %v2018_v52  ;;  %2292 = vmatmul.mubr.msk.bf16.gmra.mxu0 %vm869_vm0, %v826_v53  ;;  %v801_v60 = vmax.f32 %v711_v55, 0.0 }
 0x235   :  { %v2021_v57 = vpop.f32.mrf.mxu1 }
 0x236   :  { %v714_v58 = vadd.f32 %v2020_v56, %v2720_v48 }
 0x237   :  { %v2022_v59 = vpop.f32.mrf.mxu1 }
 0x238   :  { %v802_v61 = vmax.f32 %v714_v58, 0.0  ;;  %v2023_v62 = vadd.f32 %v2022_v59, %v2021_v57 }
 0x239   :  { %v2024_v63 = vpop.f32.mrf.mxu1 }
 0x23a   :  { %v827_v0 = vpack.c.bf16 %v802_v61, %v801_v60  ;;  %v719_v2 = vadd.f32 %v2023_v62, %v2720_v48 }
 0x23b   :  { %v2025_v1 = vpop.f32.mrf.mxu1 }
 0x23c   :  { %v2026_v3 = vadd.f32 %v2025_v1, %v2024_v63  ;;  %2295 = vmatprep.mubr.msk.bf16.mxu0 %vm869_vm0, %v827_v0  ;;  %v803_v7 = vmax.f32 %v719_v2, 0.0 }
 0x23d   :  { %v2027_v4 = vpop.f32.mrf.mxu1 }
 0x23e   :  { %v722_v5 = vadd.f32 %v2026_v3, %v2720_v48 }
 0x23f   :  { %v2028_v6 = vpop.f32.mrf.mxu1 }
 0x240   :  { %v804_v8 = vmax.f32 %v722_v5, 0.0  ;;  %v2029_v30 = vadd.f32 %v2028_v6, %v2027_v4 }
 0x241   :  { %v2030_v31 = vpop.f32.mrf.mxu1 }
 0x242   :  { %v828_v34 = vpack.c.bf16 %v804_v8, %v803_v7  ;;  %v727_v45 = vadd.f32 %v2029_v30, %v2720_v48 }
 0x243   :  { %v2031_v35 = vpop.f32.mrf.mxu1 }
 0x244   :  { %v2032_v46 = vadd.f32 %v2031_v35, %v2030_v31  ;;  %2296 = vmatmul.mubr.msk.bf16.gmra.mxu0 %vm869_vm0, %v828_v34  ;;  %v805_v51 = vmax.f32 %v727_v45, 0.0 }
 0x245   :  { %v2033_v47 = vpop.f32.mrf.mxu1 }
 0x246   :  { %v730_v49 = vadd.f32 %v2032_v46, %v2720_v48 }
 0x247   :  { %v2034_v50 = vpop.f32.mrf.mxu1 }
 0x248   :  { %v806_v52 = vmax.f32 %v730_v49, 0.0  ;;  %v2035_v53 = vadd.f32 %v2034_v50, %v2033_v47 }
 0x249   :  { %v2036_v54 = vpop.f32.mrf.mxu1 }
 0x24a   :  { %v829_v55 = vpack.c.bf16 %v806_v52, %v805_v51  ;;  %v735_v57 = vadd.f32 %v2035_v53, %v2720_v48 }
 0x24b   :  { %v2037_v56 = vpop.f32.mrf.mxu1 }
 0x24c   :  { %v2038_v58 = vadd.f32 %v2037_v56, %v2036_v54  ;;  %2299 = vmatprep.mubr.msk.bf16.mxu0 %vm869_vm0, %v829_v55  ;;  %v807_v62 = vmax.f32 %v735_v57, 0.0 }
 0x24d   :  { %v2039_v59 = vpop.f32.mrf.mxu1 }
 0x24e   :  { %v738_v60 = vadd.f32 %v2038_v58, %v2720_v48 }
 0x24f   :  { %v2040_v61 = vpop.f32.mrf.mxu1 }
 0x250   :  { %v808_v63 = vmax.f32 %v738_v60, 0.0  ;;  %v2041_v0 = vadd.f32 %v2040_v61, %v2039_v59 }
 0x251   :  { %v2042_v1 = vpop.f32.mrf.mxu1 }
 0x252   :  { %v830_v2 = vpack.c.bf16 %v808_v63, %v807_v62  ;;  %v743_v4 = vadd.f32 %v2041_v0, %v2720_v48 }
 0x253   :  { %v2043_v3 = vpop.f32.mrf.mxu1 }
 0x254   :  { %v2044_v5 = vadd.f32 %v2043_v3, %v2042_v1  ;;  %2300 = vmatmul.mubr.msk.bf16.gmra.mxu0 %vm869_vm0, %v830_v2  ;;  %v809_v30 = vmax.f32 %v743_v4, 0.0 }
 0x255   :  { %v2045_v6 = vpop.f32.mrf.mxu1 }
 0x256   :  { %v746_v7 = vadd.f32 %v2044_v5, %v2720_v48 }
 0x257   :  { %v2046_v8 = vpop.f32.mrf.mxu1 }
 0x258   :  { %v810_v31 = vmax.f32 %v746_v7, 0.0  ;;  %v2047_v34 = vadd.f32 %v2046_v8, %v2045_v6 }
 0x259   :  { %v2048_v35 = vpop.f32.mrf.mxu1 }
 0x25a   :  { %v831_v45 = vpack.c.bf16 %v810_v31, %v809_v30  ;;  %v751_v47 = vadd.f32 %v2047_v34, %v2720_v48 }
 0x25b   :  { %v2049_v46 = vpop.f32.mrf.mxu1 }
 0x25c   :  { %v2050_v49 = vadd.f32 %v2049_v46, %v2048_v35  ;;  %2303 = vmatprep.mubr.msk.bf16.mxu0 %vm869_vm0, %v831_v45  ;;  %v811_v53 = vmax.f32 %v751_v47, 0.0 }
 0x25d   :  { %v2051_v50 = vpop.f32.mrf.mxu1 }
 0x25e   :  { %v754_v51 = vadd.f32 %v2050_v49, %v2720_v48 }
 0x25f   :  { %v2052_v52 = vpop.f32.mrf.mxu1 }
 0x260   :  { %v812_v54 = vmax.f32 %v754_v51, 0.0  ;;  %v2053_v55 = vadd.f32 %v2052_v52, %v2051_v50 }
 0x261   :  { %v2054_v56 = vpop.f32.mrf.mxu1 }
 0x262   :  { %v832_v57 = vpack.c.bf16 %v812_v54, %v811_v53  ;;  %v759_v59 = vadd.f32 %v2053_v55, %v2720_v48 }
 0x263   :  { %v2055_v58 = vpop.f32.mrf.mxu1 }
 0x264   :  { %v2056_v60 = vadd.f32 %v2055_v58, %v2054_v56  ;;  %2304 = vmatmul.mubr.msk.bf16.gmra.mxu0 %vm869_vm0, %v832_v57  ;;  %v813_v0 = vmax.f32 %v759_v59, 0.0 }
 0x265   :  { %v2057_v61 = vpop.f32.mrf.mxu1 }
 0x266   :  { %v762_v62 = vadd.f32 %v2056_v60, %v2720_v48 }
 0x267   :  { %v2058_v63 = vpop.f32.mrf.mxu1 }
 0x268   :  { %v814_v1 = vmax.f32 %v762_v62, 0.0  ;;  %v2059_v2 = vadd.f32 %v2058_v63, %v2057_v61 }
 0x269   :  { %v2060_v3 = vpop.f32.mrf.mxu1 }
 0x26a   :  { %v833_v4 = vpack.c.bf16 %v814_v1, %v813_v0  ;;  %v767_v6 = vadd.f32 %v2059_v2, %v2720_v48 }
 0x26b   :  { %v2061_v5 = vpop.f32.mrf.mxu1 }
 0x26c   :  { %v2062_v7 = vadd.f32 %v2061_v5, %v2060_v3  ;;  %2307 = vmatprep.mubr.msk.bf16.mxu0 %vm869_vm0, %v833_v4  ;;  %v815_v34 = vmax.f32 %v767_v6, 0.0 }
 0x26d   :  { %v2063_v8 = vpop.f32.mrf.mxu1 }
 0x26e   :  { %v770_v30 = vadd.f32 %v2062_v7, %v2720_v48 }
 0x26f   :  { %v2064_v31 = vpop.f32.mrf.mxu1 }
 0x270   :  { %v816_v35 = vmax.f32 %v770_v30, 0.0  ;;  %v2065_v45 = vadd.f32 %v2064_v31, %v2063_v8 }
 0x271   :  { %v2066_v46 = vpop.f32.mrf.mxu1 }
 0x272   :  { %v834_v47 = vpack.c.bf16 %v816_v35, %v815_v34  ;;  %v775_v50 = vadd.f32 %v2065_v45, %v2720_v48 }
 0x273   :  { %v2067_v49 = vpop.f32.mrf.mxu1 }
 0x274   :  { %v2068_v51 = vadd.f32 %v2067_v49, %v2066_v46  ;;  %2308 = vmatmul.mubr.msk.bf16.gmra.mxu0 %vm869_vm0, %v834_v47  ;;  %v817_v55 = vmax.f32 %v775_v50, 0.0 }
 0x275   :  { %v2069_v52 = vpop.f32.mrf.mxu1 }
 0x276   :  { %v778_v53 = vadd.f32 %v2068_v51, %v2720_v48 }
 0x277   :  { %v2070_v54 = vpop.f32.mrf.mxu1 }
 0x278   :  { %v818_v56 = vmax.f32 %v778_v53, 0.0  ;;  %v2071_v57 = vadd.f32 %v2070_v54, %v2069_v52 }
 0x279   :  { %v2072_v58 = vpop.f32.mrf.mxu1 }
 0x27a   :  { %v835_v59 = vpack.c.bf16 %v818_v56, %v817_v55  ;;  %v783_v61 = vadd.f32 %v2071_v57, %v2720_v48 }
 0x27b   :  { %v2073_v60 = vpop.f32.mrf.mxu1 }
 0x27c   :  { %v2074_v62 = vadd.f32 %v2073_v60, %v2072_v58  ;;  %2311 = vmatprep.mubr.msk.bf16.mxu0 %vm869_vm0, %v835_v59  ;;  %v819_v0 = vmax.f32 %v783_v61, 0.0 }
 0x27e   :  { %v786_v63 = vadd.f32 %v2074_v62, %v2720_v48 }
 0x280   :  { %v820_v1 = vmax.f32 %v786_v63, 0.0 }
 0x282   :  { %v836_v2 = vpack.c.bf16 %v820_v1, %v819_v0 }
 0x284   :  { %2312 = vmatmul.mubr.msk.bf16.gmra.mxu0 %vm869_vm0, %v836_v2 }
 0x285   :  { %1331 = vmatprep.mubr.bf16.mxu0 %v2609_v24 }
 0x2d4   :  { %v2771_v3 = vpop.f32.mrf.mxu0 }
 0x2d6   :  { %v2773_v4 = vpop.f32.mrf.mxu0 }
 0x2d8   :  { %v2286_v5 = vpop.f32.mrf.mxu0 }
 0x2d9   :  { %v1117_v6 = vpack.c.bf16 %v2286_v5, %v2771_v3 }
 0x2da   :  { %v2776_v7 = vpop.f32.mrf.mxu0 }
 0x2db   :  { %v1116_v8 = vpack.c.bf16 %v2776_v7, %v2773_v4 }
 0x2e4   :  { %v2289_v48 = vpop.f32.mrf.mxu0 }
 0x2e6   :  { %v968_v30 = vpop.f32.mrf.mxu0 }
 0x2e8   :  { %v2290_v31 = vpop.f32.mrf.mxu0 }
 0x2e9   :  { %v1119_v34 = vpack.c.bf16 %v2290_v31, %v2289_v48 }
 0x2ea   :  { %v971_v35 = vpop.f32.mrf.mxu0 }
 0x2eb   :  { %v1118_v45 = vpack.c.bf16 %v971_v35, %v968_v30 }
 0x2f4   :  { %v2293_v46 = vpop.f32.mrf.mxu0 }
 0x2f6   :  { %v984_v24 = vpop.f32.mrf.mxu0 }
 0x2f8   :  { %v2294_v47 = vpop.f32.mrf.mxu0 }
 0x2f9   :  { %v1121_v44 = vpack.c.bf16 %v2294_v47, %v2293_v46 }
 0x2fa   :  { %v987_v49 = vpop.f32.mrf.mxu0 }
 0x2fb   :  { %v1120_v42 = vpack.c.bf16 %v987_v49, %v984_v24 }
 0x304   :  { %v2297_v50 = vpop.f32.mrf.mxu0 }
 0x306   :  { %v1000_v51 = vpop.f32.mrf.mxu0 }
 0x308   :  { %v2298_v52 = vpop.f32.mrf.mxu0 }
 0x309   :  { %v1123_v7 = vpack.c.bf16 %v2298_v52, %v2297_v50 }
 0x30a   :  { %v1003_v53 = vpop.f32.mrf.mxu0 }
 0x30b   :  { %v1122_v31 = vpack.c.bf16 %v1003_v53, %v1000_v51  ;;  %v2454_v51 = vld [vmem:[%s2925_s6 + $0x18] sm:$0xff]  }
 0x30c   :  { %2315 = vmatprep.subr.bf16.mxu1 %v2454_v51 }
 0x30d   :  { %2316 = vmatpush3.bf16.msra.mxu1 %v2454_v51 }
 0x314   :  { %v2301_v54 = vpop.f32.mrf.mxu0 }
 0x316   :  { %v1016_v55 = vpop.f32.mrf.mxu0 }
 0x318   :  { %v2302_v56 = vpop.f32.mrf.mxu0 }
 0x319   :  { %v1125_v50 = vpack.c.bf16 %v2302_v56, %v2301_v54 }
 0x31a   :  { %v1019_v57 = vpop.f32.mrf.mxu0 }
 0x31b   :  { %v1124_v52 = vpack.c.bf16 %v1019_v57, %v1016_v55 }
 0x324   :  { %v2305_v58 = vpop.f32.mrf.mxu0 }
 0x326   :  { %v1032_v59 = vpop.f32.mrf.mxu0 }
 0x328   :  { %v2306_v60 = vpop.f32.mrf.mxu0 }
 0x329   :  { %v1127_v41 = vpack.c.bf16 %v2306_v60, %v2305_v58 }
 0x32a   :  { %v1035_v61 = vpop.f32.mrf.mxu0 }
 0x32b   :  { %v1126_v40 = vpack.c.bf16 %v1035_v61, %v1032_v59 }
 0x334   :  { %v2309_v62 = vpop.f32.mrf.mxu0 }
 0x336   :  { %v1048_v63 = vpop.f32.mrf.mxu0 }
 0x338   :  { %v2310_v0 = vpop.f32.mrf.mxu0 }
 0x339   :  { %v1129_v35 = vpack.c.bf16 %v2310_v0, %v2309_v62 }
 0x33a   :  { %v1051_v1 = vpop.f32.mrf.mxu0 }
 0x33b   :  { %v1128_v43 = vpack.c.bf16 %v1051_v1, %v1048_v63 }
 0x344   :  { %v2313_v2 = vpop.f32.mrf.mxu0 }
 0x346   :  { %v1064_v3 = vpop.f32.mrf.mxu0 }
 0x348   :  { %v2314_v4 = vpop.f32.mrf.mxu0 }
 0x349   :  { %v1131_v5 = vpack.c.bf16 %v2314_v4, %v2313_v2 }
 0x34a   :  { %v1067_v48 = vpop.f32.mrf.mxu0 }
 0x34b   :  { %v1130_v30 = vpack.c.bf16 %v1067_v48, %v1064_v3  ;;  %2095 = vmatprep.subr.bf16.mxu0 %v1131_v5 }
 0x34c   :  { %2096 = vmatpush3.bf16.msra.mxu0 %v1123_v7 }
 0x34d   :  { %2097 = vmatprep.subr.bf16.mxu0 %v1130_v30 }
 0x350   :  { %2098 = vmatpush3.bf16.msra.mxu0 %v1122_v31 }
 0x351   :  { %2099 = vmatprep.subr.bf16.mxu0 %v1129_v35 }
 0x354   :  { %2100 = vmatpush3.bf16.msra.mxu0 %v1121_v44  ;;  %v2455_v44 = vld [vmem:[%s2925_s6 + $0x10] sm:$0xff]  }
 0x355   :  { %2101 = vmatprep.subr.bf16.mxu0 %v1128_v43  ;;  %2317 = vmatprep.subr.bf16.mxu1 %v2455_v44 }
 0x356   :  { %2318 = vmatpush3.bf16.msra.mxu1 %v2455_v44 }
 0x358   :  { %2102 = vmatpush3.bf16.msra.mxu0 %v1120_v42 }
 0x359   :  { %2103 = vmatprep.subr.bf16.mxu0 %v1127_v41 }
 0x35c   :  { %2104 = vmatpush3.bf16.msra.mxu0 %v1119_v34 }
 0x35d   :  { %2105 = vmatprep.subr.bf16.mxu0 %v1126_v40 }
 0x360   :  { %2106 = vmatpush3.bf16.msra.mxu0 %v1118_v45 }
 0x361   :  { %2107 = vmatprep.subr.bf16.mxu0 %v1125_v50 }
 0x364   :  { %2108 = vmatpush3.bf16.msra.mxu0 %v1117_v6 }
 0x365   :  { %2109 = vmatprep.subr.bf16.mxu0 %v1124_v52 }
 0x368   :  { %2110 = vmatpush3.bf16.msra.mxu0 %v1116_v8 }
 0x36b   :  { %1332 = vmatmul.mubr.bf16.vlgmr.msra.gmra.mxu0 %v2612_v9  ;;  %v2456_v9 = vld [vmem:[%s2925_s6 + $0x8] sm:$0xff]  }
 0x36c   :  { %1339 = vmatprep.mubr.bf16.mxu0 %v2614_v10  ;;  %2319 = vmatprep.subr.bf16.mxu1 %v2456_v9  ;;  %v2457_v10 = vld [vmem:[%s2925_s6] sm:$0xff]  }
 0x36d   :  { %2320 = vmatpush3.bf16.msra.mxu1 %v2456_v9 }
 0x36e   :  { %2321 = vmatprep.subr.bf16.mxu1 %v2457_v10 }
 0x371   :  { %2322 = vmatpush3.bf16.msra.mxu1 %v2457_v10 }
 0x373   :  { %1340 = vmatmul.mubr.bf16.gmra.mxu0 %v2618_v11  ;;  %v2938_v11 = vld [vmem:[#allocation11_spill] sm:$0xff] }
 0x374   :  { %1347 = vmatprep.mubr.bf16.mxu0 %v2620_v12  ;;  %v2939_v12 = vld [vmem:[#allocation12_spill] sm:$0xff] }
 0x37b   :  { %1348 = vmatmul.mubr.bf16.gmra.mxu0 %v2624_v13  ;;  %v2940_v13 = vld [vmem:[#allocation13_spill] sm:$0xff] }
 0x37c   :  { %1355 = vmatprep.mubr.bf16.mxu0 %v2626_v14  ;;  %v2941_v14 = vld [vmem:[#allocation14_spill] sm:$0xff] }
 0x383   :  { %1356 = vmatmul.mubr.bf16.gmra.mxu0 %v2630_v15  ;;  %v2942_v15 = vld [vmem:[#allocation15_spill] sm:$0xff] }
 0x384   :  { %1363 = vmatprep.mubr.bf16.mxu0 %v2632_v16 }
 0x38b   :  { %1364 = vmatmul.mubr.bf16.gmra.mxu0 %v2636_v17 }
 0x38c   :  { %1371 = vmatprep.mubr.bf16.mxu0 %v2638_v18 }
 0x393   :  { %1372 = vmatmul.mubr.bf16.gmra.mxu0 %v2642_v19  ;;  %v2826_v19 = vld [vmem:[%s2924_s5] ss:$0 sm:$0xff] }
 0x394   :  { %1379 = vmatprep.mubr.bf16.mxu0 %v2644_v20 }
 0x39b   :  { %1380 = vmatmul.mubr.bf16.gmra.mxu0 %v2648_v21 }
 0x39c   :  { %1387 = vmatprep.mubr.bf16.mxu0 %v2650_v22 }
 0x3a3   :  { %1388 = vmatmul.mubr.bf16.gmra.mxu0 %v2654_v23 }
 0x3a4   :  { %1395 = vmatprep.mubr.bf16.mxu0 %v2656_v25 }
 0x3ab   :  { %1396 = vmatmul.mubr.bf16.gmra.mxu0 %v2660_v26 }
 0x3ac   :  { %1403 = vmatprep.mubr.bf16.mxu0 %v2662_v27 }
 0x3b3   :  { %1404 = vmatmul.mubr.bf16.gmra.mxu0 %v2666_v28 }
 0x3b4   :  { %1411 = vmatprep.mubr.bf16.mxu0 %v2668_v29 }
 0x3bb   :  { %1412 = vmatmul.mubr.bf16.gmra.mxu0 %v2678_v32 }
 0x3bc   :  { %1419 = vmatprep.mubr.bf16.mxu0 %v2680_v33 }
 0x3c3   :  { %1420 = vmatmul.mubr.bf16.gmra.mxu0 %v2690_v36 }
 0x3c4   :  { %1427 = vmatprep.mubr.bf16.mxu0 %v2692_v37 }
 0x3cb   :  { %1428 = vmatmul.mubr.bf16.gmra.mxu0 %v2696_v38 }
 0x3cc   :  { %1435 = vmatprep.mubr.bf16.mxu0 %v2698_v39 }
 0x3d3   :  { %1436 = vmatmul.mubr.bf16.gmra.mxu0 %v2938_v11 }
 0x3d4   :  { %1443 = vmatprep.mubr.bf16.mxu0 %v2939_v12 }
 0x3db   :  { %1444 = vmatmul.mubr.bf16.gmra.mxu0 %v2940_v13 }
 0x3dc   :  { %1451 = vmatprep.mubr.bf16.mxu0 %v2941_v14 }
 0x3e3   :  { %1452 = vmatmul.mubr.bf16.gmra.mxu0 %v2942_v15 }
 0x42b   :  { %v2111_v16 = vpop.f32.mrf.mxu0 }
 0x42d   :  { %v2112_v17 = vpop.f32.mrf.mxu0 }
 0x42e   :  { %v2113_v18 = vadd.f32 %v2112_v17, %v2111_v16 }
 0x42f   :  { %v2114_v20 = vpop.f32.mrf.mxu0 }
 0x430   :  { %v1334_v22 = vadd.f32 %v2113_v18, %v2826_v19 }
 0x431   :  { %v2115_v21 = vpop.f32.mrf.mxu0 }
 0x432   :  { %v2116_v23 = vadd.f32 %v2115_v21, %v2114_v20  ;;  %v1460_v28 = vmax.f32 %v1334_v22, 0.0 }
 0x433   :  { %v2117_v25 = vpop.f32.mrf.mxu0 }
 0x434   :  { %v1337_v26 = vadd.f32 %v2116_v23, %v2826_v19 }
 0x435   :  { %v2118_v27 = vpop.f32.mrf.mxu0 }
 0x436   :  { %v1461_v29 = vmax.f32 %v1337_v26, 0.0  ;;  %v2119_v32 = vadd.f32 %v2118_v27, %v2117_v25 }
 0x437   :  { %v2120_v33 = vpop.f32.mrf.mxu0 }
 0x438   :  { %v1492_v36 = vpack.c.bf16 %v1461_v29, %v1460_v28  ;;  %v1342_v38 = vadd.f32 %v2119_v32, %v2826_v19 }
 0x439   :  { %v2121_v37 = vpop.f32.mrf.mxu0 }
 0x43a   :  { %v2122_v39 = vadd.f32 %v2121_v37, %v2120_v33  ;;  %2323 = vmatprep.mubr.msk.bf16.mxu1 %vm869_vm0, %v1492_v36  ;;  %v1462_v43 = vmax.f32 %v1342_v38, 0.0 }
 0x43b   :  { %v2123_v40 = vpop.f32.mrf.mxu0 }
 0x43c   :  { %v1345_v41 = vadd.f32 %v2122_v39, %v2826_v19 }
 0x43d   :  { %v2124_v42 = vpop.f32.mrf.mxu0 }
 0x43e   :  { %v1463_v6 = vmax.f32 %v1345_v41, 0.0  ;;  %v2125_v8 = vadd.f32 %v2124_v42, %v2123_v40 }
 0x43f   :  { %v2126_v34 = vpop.f32.mrf.mxu0 }
 0x440   :  { %v1493_v45 = vpack.c.bf16 %v1463_v6, %v1462_v43  ;;  %v1350_v24 = vadd.f32 %v2125_v8, %v2826_v19 }
 0x441   :  { %v2127_v46 = vpop.f32.mrf.mxu0 }
 0x442   :  { %v2128_v47 = vadd.f32 %v2127_v46, %v2126_v34  ;;  %2324 = vmatmul.mubr.msk.bf16.vlgmr.msra.gmra.mxu1 %vm869_vm0, %v1493_v45  ;;  %v1464_v55 = vmax.f32 %v1350_v24, 0.0 }
 0x443   :  { %v2129_v49 = vpop.f32.mrf.mxu0 }
 0x444   :  { %v1353_v53 = vadd.f32 %v2128_v47, %v2826_v19 }
 0x445   :  { %v2130_v54 = vpop.f32.mrf.mxu0 }
 0x446   :  { %v1465_v56 = vmax.f32 %v1353_v53, 0.0  ;;  %v2131_v57 = vadd.f32 %v2130_v54, %v2129_v49 }
 0x447   :  { %v2132_v58 = vpop.f32.mrf.mxu0 }
 0x448   :  { %v1494_v59 = vpack.c.bf16 %v1465_v56, %v1464_v55  ;;  %v1358_v61 = vadd.f32 %v2131_v57, %v2826_v19 }
 0x449   :  { %v2133_v60 = vpop.f32.mrf.mxu0 }
 0x44a   :  { %v2134_v62 = vadd.f32 %v2133_v60, %v2132_v58  ;;  %2327 = vmatprep.mubr.msk.bf16.mxu1 %vm869_vm0, %v1494_v59  ;;  %v1466_v2 = vmax.f32 %v1358_v61, 0.0 }
 0x44b   :  { %v2135_v63 = vpop.f32.mrf.mxu0 }
 0x44c   :  { %v1361_v0 = vadd.f32 %v2134_v62, %v2826_v19 }
 0x44d   :  { %v2136_v1 = vpop.f32.mrf.mxu0 }
 0x44e   :  { %v1467_v3 = vmax.f32 %v1361_v0, 0.0  ;;  %v2137_v4 = vadd.f32 %v2136_v1, %v2135_v63 }
 0x44f   :  { %v2138_v5 = vpop.f32.mrf.mxu0 }
 0x450   :  { %v1495_v7 = vpack.c.bf16 %v1467_v3, %v1466_v2  ;;  %v1366_v30 = vadd.f32 %v2137_v4, %v2826_v19 }
 0x451   :  { %v2139_v48 = vpop.f32.mrf.mxu0 }
 0x452   :  { %v2140_v31 = vadd.f32 %v2139_v48, %v2138_v5  ;;  %2328 = vmatmul.mubr.msk.bf16.gmra.mxu1 %vm869_vm0, %v1495_v7  ;;  %v1468_v51 = vmax.f32 %v1366_v30, 0.0 }
 0x453   :  { %v2141_v35 = vpop.f32.mrf.mxu0 }
 0x454   :  { %v1369_v50 = vadd.f32 %v2140_v31, %v2826_v19 }
 0x455   :  { %v2142_v52 = vpop.f32.mrf.mxu0 }
 0x456   :  { %v1469_v44 = vmax.f32 %v1369_v50, 0.0  ;;  %v2143_v9 = vadd.f32 %v2142_v52, %v2141_v35 }
 0x457   :  { %v2144_v10 = vpop.f32.mrf.mxu0 }
 0x458   :  { %v1496_v11 = vpack.c.bf16 %v1469_v44, %v1468_v51  ;;  %v1374_v13 = vadd.f32 %v2143_v9, %v2826_v19 }
 0x459   :  { %v2145_v12 = vpop.f32.mrf.mxu0 }
 0x45a   :  { %v2146_v14 = vadd.f32 %v2145_v12, %v2144_v10  ;;  %2331 = vmatprep.mubr.msk.bf16.mxu1 %vm869_vm0, %v1496_v11  ;;  %v1470_v18 = vmax.f32 %v1374_v13, 0.0 }
 0x45b   :  { %v2147_v15 = vpop.f32.mrf.mxu0 }
 0x45c   :  { %v1377_v16 = vadd.f32 %v2146_v14, %v2826_v19 }
 0x45d   :  { %v2148_v17 = vpop.f32.mrf.mxu0 }
 0x45e   :  { %v1471_v20 = vmax.f32 %v1377_v16, 0.0  ;;  %v2149_v21 = vadd.f32 %v2148_v17, %v2147_v15 }
 0x45f   :  { %v2150_v22 = vpop.f32.mrf.mxu0 }
 0x460   :  { %v1497_v23 = vpack.c.bf16 %v1471_v20, %v1470_v18  ;;  %v1382_v26 = vadd.f32 %v2149_v21, %v2826_v19 }
 0x461   :  { %v2151_v25 = vpop.f32.mrf.mxu0 }
 0x462   :  { %v2152_v27 = vadd.f32 %v2151_v25, %v2150_v22  ;;  %2332 = vmatmul.mubr.msk.bf16.gmra.mxu1 %vm869_vm0, %v1497_v23  ;;  %v1472_v33 = vmax.f32 %v1382_v26, 0.0 }
 0x463   :  { %v2153_v28 = vpop.f32.mrf.mxu0 }
 0x464   :  { %v1385_v29 = vadd.f32 %v2152_v27, %v2826_v19 }
 0x465   :  { %v2154_v32 = vpop.f32.mrf.mxu0 }
 0x466   :  { %v1473_v36 = vmax.f32 %v1385_v29, 0.0  ;;  %v2155_v37 = vadd.f32 %v2154_v32, %v2153_v28 }
 0x467   :  { %v2156_v38 = vpop.f32.mrf.mxu0 }
 0x468   :  { %v1498_v39 = vpack.c.bf16 %v1473_v36, %v1472_v33  ;;  %v1390_v41 = vadd.f32 %v2155_v37, %v2826_v19 }
 0x469   :  { %v2157_v40 = vpop.f32.mrf.mxu0 }
 0x46a   :  { %v2158_v42 = vadd.f32 %v2157_v40, %v2156_v38  ;;  %2335 = vmatprep.mubr.msk.bf16.mxu1 %vm869_vm0, %v1498_v39  ;;  %v1474_v34 = vmax.f32 %v1390_v41, 0.0 }
 0x46b   :  { %v2159_v43 = vpop.f32.mrf.mxu0 }
 0x46c   :  { %v1393_v6 = vadd.f32 %v2158_v42, %v2826_v19 }
 0x46d   :  { %v2160_v8 = vpop.f32.mrf.mxu0 }
 0x46e   :  { %v1475_v45 = vmax.f32 %v1393_v6, 0.0  ;;  %v2161_v46 = vadd.f32 %v2160_v8, %v2159_v43 }
 0x46f   :  { %v2162_v24 = vpop.f32.mrf.mxu0 }
 0x470   :  { %v1499_v47 = vpack.c.bf16 %v1475_v45, %v1474_v34  ;;  %v1398_v53 = vadd.f32 %v2161_v46, %v2826_v19 }
 0x471   :  { %v2163_v49 = vpop.f32.mrf.mxu0 }
 0x472   :  { %v2164_v54 = vadd.f32 %v2163_v49, %v2162_v24  ;;  %2336 = vmatmul.mubr.msk.bf16.gmra.mxu1 %vm869_vm0, %v1499_v47  ;;  %v1476_v58 = vmax.f32 %v1398_v53, 0.0 }
 0x473   :  { %v2165_v55 = vpop.f32.mrf.mxu0 }
 0x474   :  { %v1401_v56 = vadd.f32 %v2164_v54, %v2826_v19 }
 0x475   :  { %v2166_v57 = vpop.f32.mrf.mxu0 }
 0x476   :  { %v1477_v59 = vmax.f32 %v1401_v56, 0.0  ;;  %v2167_v60 = vadd.f32 %v2166_v57, %v2165_v55 }
 0x477   :  { %v2168_v61 = vpop.f32.mrf.mxu0 }
 0x478   :  { %v1500_v62 = vpack.c.bf16 %v1477_v59, %v1476_v58  ;;  %v1406_v0 = vadd.f32 %v2167_v60, %v2826_v19 }
 0x479   :  { %v2169_v63 = vpop.f32.mrf.mxu0 }
 0x47a   :  { %v2170_v1 = vadd.f32 %v2169_v63, %v2168_v61  ;;  %2339 = vmatprep.mubr.msk.bf16.mxu1 %vm869_vm0, %v1500_v62  ;;  %v1478_v5 = vmax.f32 %v1406_v0, 0.0 }
 0x47b   :  { %v2171_v2 = vpop.f32.mrf.mxu0 }
 0x47c   :  { %v1409_v3 = vadd.f32 %v2170_v1, %v2826_v19 }
 0x47d   :  { %v2172_v4 = vpop.f32.mrf.mxu0 }
 0x47e   :  { %v1479_v7 = vmax.f32 %v1409_v3, 0.0  ;;  %v2173_v48 = vadd.f32 %v2172_v4, %v2171_v2 }
 0x47f   :  { %v2174_v30 = vpop.f32.mrf.mxu0 }
 0x480   :  { %v1501_v31 = vpack.c.bf16 %v1479_v7, %v1478_v5  ;;  %v1414_v50 = vadd.f32 %v2173_v48, %v2826_v19 }
 0x481   :  { %v2175_v35 = vpop.f32.mrf.mxu0 }
 0x482   :  { %v2176_v52 = vadd.f32 %v2175_v35, %v2174_v30  ;;  %2340 = vmatmul.mubr.msk.bf16.gmra.mxu1 %vm869_vm0, %v1501_v31  ;;  %v1480_v10 = vmax.f32 %v1414_v50, 0.0  ;;  %v2879_v31 = vld [vmem:[%s2926_s7] ss:$0 sm:$0xff]  ;;  %s2530_s7 = smov [#allocation7]  }
 0x483   :  { %v2177_v51 = vpop.f32.mrf.mxu0  ;;  %s1793_s28 = sshll.u32 %s2530_s7, 4  ;;  %s1794_s28 = int_to_ptr.vmem [resolvable:$true] %s1793_s28 }
 0x484   :  { %v1417_v44 = vadd.f32 %v2176_v52, %v2826_v19  ;;  %s2498_s29 = scalar_lea.vmem %s1794_s28, 4096  ;;  %p2503_p11 = scmp.lt.s32.totalorder %s1794_s28, %s1794_s28 }
 0x485   :  { %v2178_v9 = vpop.f32.mrf.mxu0  ;;  %p2499_p10 = scmp.ne.s32.totalorder %s1794_s28, %s2498_s29  ;;  %p2504_p12 = scmp.lt.s32.totalorder %s2498_s29, %s2498_s29 }
 0x486   :  { %v1481_v11 = vmax.f32 %v1417_v44, 0.0  ;;  %v2179_v12 = vadd.f32 %v2178_v9, %v2177_v51 }
 0x487   :  { %v2180_v13 = vpop.f32.mrf.mxu0  ;;  %p2505_p13 = por %p2504_p12, %p2503_p11 }
 0x488   :  { %v1502_v14 = vpack.c.bf16 %v1481_v11, %v1480_v10  ;;  %v1422_v16 = vadd.f32 %v2179_v12, %v2826_v19 }
 0x489   :  { %v2181_v15 = vpop.f32.mrf.mxu0  ;;  %p2506_p0 = pnand %p2505_p13, %p2499_p10 }
 0x48a   :  { %v2182_v17 = vadd.f32 %v2181_v15, %v2180_v13  ;;  %2343 = vmatprep.mubr.msk.bf16.mxu1 %vm869_vm0, %v1502_v14  ;;  %v1482_v22 = vmax.f32 %v1422_v16, 0.0 }
 0x48b   :  { %v2183_v18 = vpop.f32.mrf.mxu0 }
 0x48c   :  { %v1425_v20 = vadd.f32 %v2182_v17, %v2826_v19 }
 0x48d   :  { %v2184_v21 = vpop.f32.mrf.mxu0 }
 0x48e   :  { %v1483_v23 = vmax.f32 %v1425_v20, 0.0  ;;  %v2185_v25 = vadd.f32 %v2184_v21, %v2183_v18 }
 0x48f   :  { %v2186_v26 = vpop.f32.mrf.mxu0 }
 0x490   :  { %v1503_v27 = vpack.c.bf16 %v1483_v23, %v1482_v22  ;;  %v1430_v29 = vadd.f32 %v2185_v25, %v2826_v19 }
 0x491   :  { %v2187_v28 = vpop.f32.mrf.mxu0 }
 0x492   :  { %v2188_v32 = vadd.f32 %v2187_v28, %v2186_v26  ;;  %2344 = vmatmul.mubr.msk.bf16.gmra.mxu1 %vm869_vm0, %v1503_v27  ;;  %v1484_v38 = vmax.f32 %v1430_v29, 0.0 }
 0x493   :  { %v2189_v33 = vpop.f32.mrf.mxu0 }
 0x494   :  { %v1433_v36 = vadd.f32 %v2188_v32, %v2826_v19 }
 0x495   :  { %v2190_v37 = vpop.f32.mrf.mxu0 }
 0x496   :  { %v1485_v39 = vmax.f32 %v1433_v36, 0.0  ;;  %v2191_v40 = vadd.f32 %v2190_v37, %v2189_v33 }
 0x497   :  { %v2192_v41 = vpop.f32.mrf.mxu0 }
 0x498   :  { %v1504_v42 = vpack.c.bf16 %v1485_v39, %v1484_v38  ;;  %v1438_v6 = vadd.f32 %v2191_v40, %v2826_v19 }
 0x499   :  { %v2193_v43 = vpop.f32.mrf.mxu0 }
 0x49a   :  { %v2194_v8 = vadd.f32 %v2193_v43, %v2192_v41  ;;  %2347 = vmatprep.mubr.msk.bf16.mxu1 %vm869_vm0, %v1504_v42  ;;  %v1486_v24 = vmax.f32 %v1438_v6, 0.0 }
 0x49b   :  { %v2195_v34 = vpop.f32.mrf.mxu0 }
 0x49c   :  { %v1441_v45 = vadd.f32 %v2194_v8, %v2826_v19 }
 0x49d   :  { %v2196_v46 = vpop.f32.mrf.mxu0 }
 0x49e   :  { %v1487_v47 = vmax.f32 %v1441_v45, 0.0  ;;  %v2197_v49 = vadd.f32 %v2196_v46, %v2195_v34 }
 0x49f   :  { %v2198_v53 = vpop.f32.mrf.mxu0 }
 0x4a0   :  { %v1505_v54 = vpack.c.bf16 %v1487_v47, %v1486_v24  ;;  %v1446_v56 = vadd.f32 %v2197_v49, %v2826_v19 }
 0x4a1   :  { %v2199_v55 = vpop.f32.mrf.mxu0 }
 0x4a2   :  { %v2200_v57 = vadd.f32 %v2199_v55, %v2198_v53  ;;  %2348 = vmatmul.mubr.msk.bf16.gmra.mxu1 %vm869_vm0, %v1505_v54  ;;  %v1488_v61 = vmax.f32 %v1446_v56, 0.0 }
 0x4a3   :  { %v2201_v58 = vpop.f32.mrf.mxu0 }
 0x4a4   :  { %v1449_v59 = vadd.f32 %v2200_v57, %v2826_v19 }
 0x4a5   :  { %v2202_v60 = vpop.f32.mrf.mxu0 }
 0x4a6   :  { %v1489_v62 = vmax.f32 %v1449_v59, 0.0  ;;  %v2203_v63 = vadd.f32 %v2202_v60, %v2201_v58 }
 0x4a7   :  { %v2204_v0 = vpop.f32.mrf.mxu0 }
 0x4a8   :  { %v1506_v1 = vpack.c.bf16 %v1489_v62, %v1488_v61  ;;  %v1454_v3 = vadd.f32 %v2203_v63, %v2826_v19 }
 0x4a9   :  { %v2205_v2 = vpop.f32.mrf.mxu0 }
 0x4aa   :  { %v2206_v4 = vadd.f32 %v2205_v2, %v2204_v0  ;;  %2351 = vmatprep.mubr.msk.bf16.mxu1 %vm869_vm0, %v1506_v1  ;;  %v1490_v7 = vmax.f32 %v1454_v3, 0.0 }
 0x4ac   :  { %v1457_v5 = vadd.f32 %v2206_v4, %v2826_v19 }
 0x4ae   :  { %v1491_v48 = vmax.f32 %v1457_v5, 0.0 }
 0x4b0   :  { %v1507_v30 = vpack.c.bf16 %v1491_v48, %v1490_v7 }
 0x4b2   :  { %2352 = vmatmul.mubr.msk.bf16.gmra.mxu1 %vm869_vm0, %v1507_v30 }
 0x502   :  { %v2325_v35 = vpop.f32.mrf.mxu1 }
 0x503   :  { %v1638_v50 = vadd.f32 %v2325_v35, %v2879_v31 }
 0x504   :  { %v1629_v52 = vpop.f32.mrf.mxu1 }
 0x505   :  { %1758 = vst [vmem:[#allocation7 + $0x10] sm:$0xff] %v1638_v50  ;;  %v1630_v51 = vadd.f32 %v2879_v31, %v1629_v52 }
 0x506   :  { %v2326_v44 = vpop.f32.mrf.mxu1 }
 0x507   :  { %1756 = vst [vmem:[#allocation7] sm:$0xff] %v1630_v51  ;;  %v1641_v19 = vadd.f32 %v2326_v44, %v2879_v31 }
 0x508   :  { %v1632_v9 = vpop.f32.mrf.mxu1 }
 0x509   :  { %1759 = vst [vmem:[#allocation7 + $0x18] sm:$0xff] %v1641_v19  ;;  %v1633_v10 = vadd.f32 %v2879_v31, %v1632_v9 }
 0x50b   :  { %1757 = vst [vmem:[#allocation7 + $0x8] sm:$0xff] %v1633_v10 }
 0x512   :  { %v2329_v11 = vpop.f32.mrf.mxu1 }
 0x513   :  { %v1654_v12 = vadd.f32 %v2329_v11, %v2879_v31 }
 0x514   :  { %v1645_v13 = vpop.f32.mrf.mxu1 }
 0x515   :  { %1762 = vst [vmem:[#allocation7 + $0x30] sm:$0xff] %v1654_v12  ;;  %v1646_v14 = vadd.f32 %v2879_v31, %v1645_v13 }
 0x516   :  { %v2330_v15 = vpop.f32.mrf.mxu1 }
 0x517   :  { %1760 = vst [vmem:[#allocation7 + $0x20] sm:$0xff] %v1646_v14  ;;  %v1657_v16 = vadd.f32 %v2330_v15, %v2879_v31 }
 0x518   :  { %v1648_v17 = vpop.f32.mrf.mxu1 }
 0x519   :  { %1763 = vst [vmem:[#allocation7 + $0x38] sm:$0xff] %v1657_v16  ;;  %v1649_v18 = vadd.f32 %v2879_v31, %v1648_v17 }
 0x51b   :  { %1761 = vst [vmem:[#allocation7 + $0x28] sm:$0xff] %v1649_v18 }
 0x522   :  { %v2333_v20 = vpop.f32.mrf.mxu1 }
 0x523   :  { %v1670_v21 = vadd.f32 %v2333_v20, %v2879_v31 }
 0x524   :  { %v1661_v22 = vpop.f32.mrf.mxu1 }
 0x525   :  { %1766 = vst [vmem:[#allocation7 + $0x50] sm:$0xff] %v1670_v21  ;;  %v1662_v23 = vadd.f32 %v2879_v31, %v1661_v22 }
 0x526   :  { %v2334_v25 = vpop.f32.mrf.mxu1 }
 0x527   :  { %1764 = vst [vmem:[#allocation7 + $0x40] sm:$0xff] %v1662_v23  ;;  %v1673_v26 = vadd.f32 %v2334_v25, %v2879_v31 }
 0x528   :  { %v1664_v27 = vpop.f32.mrf.mxu1 }
 0x529   :  { %1767 = vst [vmem:[#allocation7 + $0x58] sm:$0xff] %v1673_v26  ;;  %v1665_v28 = vadd.f32 %v2879_v31, %v1664_v27 }
 0x52b   :  { %1765 = vst [vmem:[#allocation7 + $0x48] sm:$0xff] %v1665_v28 }
 0x532   :  { %v2337_v29 = vpop.f32.mrf.mxu1 }
 0x533   :  { %v1686_v32 = vadd.f32 %v2337_v29, %v2879_v31 }
 0x534   :  { %v1677_v33 = vpop.f32.mrf.mxu1 }
 0x535   :  { %1770 = vst [vmem:[#allocation7 + $0x70] sm:$0xff] %v1686_v32  ;;  %v1678_v36 = vadd.f32 %v2879_v31, %v1677_v33 }
 0x536   :  { %v2338_v37 = vpop.f32.mrf.mxu1 }
 0x537   :  { %1768 = vst [vmem:[#allocation7 + $0x60] sm:$0xff] %v1678_v36  ;;  %v1689_v38 = vadd.f32 %v2338_v37, %v2879_v31 }
 0x538   :  { %v1680_v39 = vpop.f32.mrf.mxu1 }
 0x539   :  { %1771 = vst [vmem:[#allocation7 + $0x78] sm:$0xff] %v1689_v38  ;;  %v1681_v40 = vadd.f32 %v2879_v31, %v1680_v39 }
 0x53b   :  { %1769 = vst [vmem:[#allocation7 + $0x68] sm:$0xff] %v1681_v40 }
 0x542   :  { %v2341_v41 = vpop.f32.mrf.mxu1 }
 0x543   :  { %v1702_v42 = vadd.f32 %v2341_v41, %v2879_v31 }
 0x544   :  { %v1693_v43 = vpop.f32.mrf.mxu1 }
 0x545   :  { %1774 = vst [vmem:[#allocation7 + $0x90] sm:$0xff] %v1702_v42  ;;  %v1694_v6 = vadd.f32 %v2879_v31, %v1693_v43 }
 0x546   :  { %v2342_v8 = vpop.f32.mrf.mxu1 }
 0x547   :  { %1772 = vst [vmem:[#allocation7 + $0x80] sm:$0xff] %v1694_v6  ;;  %v1705_v34 = vadd.f32 %v2342_v8, %v2879_v31 }
 0x548   :  { %v1696_v45 = vpop.f32.mrf.mxu1 }
 0x549   :  { %1775 = vst [vmem:[#allocation7 + $0x98] sm:$0xff] %v1705_v34  ;;  %v1697_v46 = vadd.f32 %v2879_v31, %v1696_v45 }
 0x54b   :  { %1773 = vst [vmem:[#allocation7 + $0x88] sm:$0xff] %v1697_v46 }
 0x552   :  { %v2345_v24 = vpop.f32.mrf.mxu1 }
 0x553   :  { %v1718_v47 = vadd.f32 %v2345_v24, %v2879_v31 }
 0x554   :  { %v1709_v49 = vpop.f32.mrf.mxu1 }
 0x555   :  { %1778 = vst [vmem:[#allocation7 + $0xb0] sm:$0xff] %v1718_v47  ;;  %v1710_v53 = vadd.f32 %v2879_v31, %v1709_v49 }
 0x556   :  { %v2346_v54 = vpop.f32.mrf.mxu1 }
 0x557   :  { %1776 = vst [vmem:[#allocation7 + $0xa0] sm:$0xff] %v1710_v53  ;;  %v1721_v55 = vadd.f32 %v2346_v54, %v2879_v31 }
 0x558   :  { %v1712_v56 = vpop.f32.mrf.mxu1 }
 0x559   :  { %1779 = vst [vmem:[#allocation7 + $0xb8] sm:$0xff] %v1721_v55  ;;  %v1713_v57 = vadd.f32 %v2879_v31, %v1712_v56 }
 0x55b   :  { %1777 = vst [vmem:[#allocation7 + $0xa8] sm:$0xff] %v1713_v57 }
 0x562   :  { %v2349_v58 = vpop.f32.mrf.mxu1 }
 0x563   :  { %v1734_v59 = vadd.f32 %v2349_v58, %v2879_v31 }
 0x564   :  { %v1725_v60 = vpop.f32.mrf.mxu1 }
 0x565   :  { %1782 = vst [vmem:[#allocation7 + $0xd0] sm:$0xff] %v1734_v59  ;;  %v1726_v61 = vadd.f32 %v2879_v31, %v1725_v60 }
 0x566   :  { %v2350_v62 = vpop.f32.mrf.mxu1 }
 0x567   :  { %1780 = vst [vmem:[#allocation7 + $0xc0] sm:$0xff] %v1726_v61  ;;  %v1737_v63 = vadd.f32 %v2350_v62, %v2879_v31 }
 0x568   :  { %v1728_v0 = vpop.f32.mrf.mxu1 }
 0x569   :  { %1783 = vst [vmem:[#allocation7 + $0xd8] sm:$0xff] %v1737_v63  ;;  %v1729_v1 = vadd.f32 %v2879_v31, %v1728_v0 }
 0x56b   :  { %1781 = vst [vmem:[#allocation7 + $0xc8] sm:$0xff] %v1729_v1 }
 0x572   :  { %v2353_v2 = vpop.f32.mrf.mxu1 }
 0x573   :  { %v1750_v3 = vadd.f32 %v2353_v2, %v2879_v31 }
 0x574   :  { %v1741_v4 = vpop.f32.mrf.mxu1 }
 0x575   :  { %1786 = vst [vmem:[#allocation7 + $0xf0] sm:$0xff] %v1750_v3  ;;  %v1742_v5 = vadd.f32 %v2879_v31, %v1741_v4 }
 0x576   :  { %v2354_v7 = vpop.f32.mrf.mxu1 }
 0x577   :  { %1784 = vst [vmem:[#allocation7 + $0xe0] sm:$0xff] %v1742_v5  ;;  %v1753_v48 = vadd.f32 %v2354_v7, %v2879_v31 }
 0x578   :  { %v1744_v30 = vpop.f32.mrf.mxu1 }
 0x579   :  { %1787 = vst [vmem:[#allocation7 + $0xf8] sm:$0xff] %v1753_v48  ;;  %v1745_v35 = vadd.f32 %v2879_v31, %v1744_v30 }
 0x57b   :  { %1785 = vst [vmem:[#allocation7 + $0xe8] sm:$0xff] %v1745_v35 }
 0x57c   :  { %2509 = shalt.err (!%p2506_p0)
}
 0x57d   :  { %1799 = dma.vmem_to_hbm [thread:$0]  %s1794_s28, 4096, %s2927_s8, [#allocation4], %s2528_s15, %s2528_s15, %s2529_s16  }
 0x57e   :  { %2522 = dma.done.wait [#allocation4], 4096  }
 0x57f   :  { %2523 = vsyncadd [#allocation4], 4294963200 }
 0x580   :  { %1803 = vsyncpa [#allocation3], 1 }
 0x581   :  { %1804 = vsyncpa [#allocation6], 1 }
 0x582   :  { %1805 = vsyncpa [#allocation4], 1 }

</bundles_post_ra>
